<compile_context>
chip_gen: v6e
topology: v6e:2x2x1
jax: 0.10.0
libtpu: 0.0.40
codegen_flags: <defaults>
</compile_context>

<pallas_src>
import jax
import jax.numpy as jnp
from jax.experimental import pallas as pl
from jax.experimental.pallas import tpu as pltpu

# ---- small, TPU-friendly hyperparameters consistent with the module structure ----
D_K = 32          # per-head key dim      (reference: 64)
D_V = 32          # per-head value dim    (reference: 64)
N_HEADS = 4       # heads                 (reference: 8)
D_EMB = 128       # embedding dim         (reference: 512)
D_FF = 256        # feed-forward dim      (reference: 2048)
N_LAYERS = 2      # decoder layers        (reference: 6)
EPS = 1e-5        # nn.LayerNorm default eps
ATTN_SCALE = 1.0 / float(D_K) ** 0.5
HDK = N_HEADS * D_K          # 128
HDV = N_HEADS * D_V          # 128

# packed `vecs` row indices
ROW_BO, ROW_G_MHA, ROW_B_MHA, ROW_G1, ROW_B1 = 0, 1, 2, 3, 4
ROW_BF2, ROW_G_FF, ROW_B_FF, ROW_G2, ROW_B2 = 5, 6, 7, 8, 9


def _layer_norm(x, gamma, beta):
    mu = jnp.mean(x, axis=-1, keepdims=True)
    var = jnp.mean((x - mu) ** 2, axis=-1, keepdims=True)
    return (x - mu) * jax.lax.rsqrt(var + EPS) * gamma + beta


def decoder_stack_kernel(x_ref, wqkv_ref, wo_ref, wf1_ref, wf2_ref,
                         bwide_ref, vecs_ref, o_ref):
    f32, bf = jnp.float32, jnp.bfloat16
    x = x_ref[0]                                   # [S, E] f32 (one batch element)
    seq = x.shape[0]

    # Layer-invariant causal additive bias, built once per grid step.
    r = jax.lax.broadcasted_iota(jnp.int32, (seq, seq), 0)
    c = jax.lax.broadcasted_iota(jnp.int32, (seq, seq), 1)
    causal_bias = jnp.where(c <= r, f32(0.0), f32(-1e9))

    for l in range(N_LAYERS):                      # static unroll, weights resident
        bw = bwide_ref[l]                          # [8, 3*E] f32
        vec = vecs_ref[l]                          # [16, E]  f32
        b_qkv = bw[0:1, :]                         # [1, 3*H*D_K]
        b_f1 = bw[1:2, :D_FF]                      # [1, D_FF]
        bo = vec[ROW_BO:ROW_BO + 1]
        g_mha, b_mha = vec[ROW_G_MHA:ROW_G_MHA + 1], vec[ROW_B_MHA:ROW_B_MHA + 1]
        g1, b1 = vec[ROW_G1:ROW_G1 + 1], vec[ROW_B1:ROW_B1 + 1]
        b_f2 = vec[ROW_BF2:ROW_BF2 + 1]
        g_ff, b_ff = vec[ROW_G_FF:ROW_G_FF + 1], vec[ROW_B_FF:ROW_B_FF + 1]
        g2, b2 = vec[ROW_G2:ROW_G2 + 1], vec[ROW_B2:ROW_B2 + 1]

        # --- MultiHeadAttention: fused lane-dense QKV projection -------------
        xb = x.astype(bf)
        qkv = jnp.dot(xb, wqkv_ref[l], preferred_element_type=f32) + b_qkv  # [S, 3*H*Dk]

        ctx_heads = []
        for h in range(N_HEADS):
            qh = qkv[:, h * D_K:(h + 1) * D_K].astype(bf)                    # [S, Dk]
            kh = qkv[:, HDK + h * D_K: HDK + (h + 1) * D_K].astype(bf)       # [S, Dk]
            vh = qkv[:, 2 * HDK + h * D_V: 2 * HDK + (h + 1) * D_V].astype(bf)
            # scores = q @ k^T (contract last dims, no explicit transpose)
            s = jax.lax.dot_general(qh, kh, (((1,), (1,)), ((), ())),
                                    preferred_element_type=f32) * ATTN_SCALE  # [S, S]
            s = s + causal_bias
            s = s - jnp.max(s, axis=-1, keepdims=True)
            p = jnp.exp(s)
            p = p * pl.reciprocal(jnp.sum(p, axis=-1, keepdims=True), approx=True)
            ctx_heads.append(jnp.dot(p.astype(bf), vh,
                                     preferred_element_type=f32))            # [S, Dv]
        ctx = jnp.concatenate(ctx_heads, axis=-1)                            # [S, H*Dv]

        # single fused output projection (K = H*D_V = 128)
        attn = jnp.dot(ctx.astype(bf), wo_ref[l], preferred_element_type=f32) + bo
        attn = _layer_norm(attn + x, g_mha, b_mha)        # MHA layer_norm
        n1 = _layer_norm(x + attn, g1, b1)                # DecoderLayer.norm1

        # --- PoswiseFeedForwardNet (Conv1d kernel_size=1 == Linear over E) ---
        h1 = jnp.dot(n1.astype(bf), wf1_ref[l], preferred_element_type=f32) + b_f1
        h1 = jnp.maximum(h1, 0.0)
        ff = jnp.dot(h1.astype(bf), wf2_ref[l], preferred_element_type=f32) + b_f2
        ff = _layer_norm(ff + n1, g_ff, b_ff)             # FFN layer_norm
        x = _layer_norm(n1 + ff, g2, b2)                  # DecoderLayer.norm2

    o_ref[0] = x


def decoder_stack_pallas(x, params):
    B, S, E = x.shape
    w_qkv, w_o = params["w_qkv"], params["w_o"]
    w_f1, w_f2 = params["w_f1"], params["w_f2"]
    b_wide, vecs = params["b_wide"], params["vecs"]

    def resident(a):
        # Full-[L, ...] block with a constant index_map: fetched once, stays in VMEM.
        return pl.BlockSpec(a.shape, lambda b, n=a.ndim: (0,) * n)

    return pl.pallas_call(
        decoder_stack_kernel,
        out_shape=jax.ShapeDtypeStruct((B, S, E), jnp.float32),
        grid_spec=pltpu.PrefetchScalarGridSpec(
            num_scalar_prefetch=0,
            grid=(B,),                              # batch axis: parallel (v7x 2nd TC)
            in_specs=[pl.BlockSpec((1, S, E), lambda b: (b, 0, 0)),
                      resident(w_qkv), resident(w_o),
                      resident(w_f1), resident(w_f2),
                      resident(b_wide), resident(vecs)],
            out_specs=pl.BlockSpec((1, S, E), lambda b: (b, 0, 0)),
        ),
        compiler_params=pltpu.CompilerParams(dimension_semantics=("parallel",)),
    )(x, w_qkv, w_o, w_f1, w_f2, b_wide, vecs)


def init_decoder_params(key, vocab_size, max_seq_len):
    ks = jax.random.split(key, 9)
    s = 0.02
    L, E, FF = N_LAYERS, D_EMB, D_FF

    def w(k, shape):   # matmul weights in bf16 -> halves weight DMA / VMEM footprint
        return (jax.random.normal(k, shape, jnp.float32) * s).astype(jnp.bfloat16)

    def b(k, shape):   # biases / LN params stay f32 (elementwise path)
        return jax.random.normal(k, shape, jnp.float32) * 0.05

    # packed "wide" biases: row 0 = b_qkv (3*H*D_K), row 1[:FF] = b_f1
    b_wide = jnp.zeros((L, 8, 3 * E), jnp.float32)
    b_wide = b_wide.at[:, 0, :3 * HDK].set(b(ks[6], (L, 3 * HDK)))
    b_wide = b_wide.at[:, 1, :FF].set(b(ks[7], (L, FF)))

    # packed E-wide vectors: bo, g_mha, b_mha, g1, b1, bf2, g_ff, b_ff, g2, b2
    vecs = jnp.zeros((L, 16, E), jnp.float32)
    vecs = vecs.at[:, :10, :].set(b(ks[8], (L, 10, E)))
    for row in (ROW_G_MHA, ROW_G1, ROW_G_FF, ROW_G2):   # gammas centered at 1
        vecs = vecs.at[:, row, :].add(1.0)

    return {
        "src_emb": jax.random.normal(ks[0], (vocab_size, E), jnp.float32) * s,
        "pos_emb": jax.random.normal(ks[1], (max_seq_len, E), jnp.float32) * s,
        "w_qkv": w(ks[2], (L, E, 3 * HDK)),     # [2, 128, 384]  fused Q|K|V (head-major)
        "w_o":   w(ks[3], (L, HDV, E)),         # [2, 128, 128]
        "w_f1":  w(ks[4], (L, E, FF)),          # [2, 128, 256]
        "w_f2":  w(ks[5], (L, FF, E)),          # [2, 256, 128]
        "b_wide": b_wide,                       # [2, 8, 384]
        "vecs": vecs,                           # [2, 16, 128]
    }


@jax.jit
def decoder_forward(params, dec_inputs):
    B, S = dec_inputs.shape
    # Embedding lookup is glue (gather) — done in plain JAX. Reproduces the reference
    # quirk: positional embedding indexed by the *batch* index.
    positions = jnp.arange(B)[:, None]                                  # [B, 1]
    x = params["src_emb"][dec_inputs] + params["pos_emb"][positions]    # [B, S, E]
    return decoder_stack_pallas(x, params)


# ---- pure-JAX reference (mirrors the kernel's bf16-at-matmul-inputs precision) ----
def _ref_forward(params, dec_inputs):
    B, S = dec_inputs.shape
    f32, bf = jnp.float32, jnp.bfloat16
    x = params["src_emb"][dec_inputs] + params["pos_emb"][jnp.arange(B)[:, None]]
    mask = jnp.triu(jnp.ones((S, S), jnp.bool_), k=1)
    bias = jnp.where(mask, f32(-1e9), f32(0.0))

    def ln(v, g, b):
        mu = v.mean(-1, keepdims=True)
        var = ((v - mu) ** 2).mean(-1, keepdims=True)
        return (v - mu) / jnp.sqrt(var + EPS) * g + b

    for l in range(N_LAYERS):
        wqkv = params["w_qkv"][l]
        b_qkv = params["b_wide"][l, 0, :3 * HDK]
        b_f1 = params["b_wide"][l, 1, :D_FF]
        vec = params["vecs"][l]
        bo, g_mha, b_mha = vec[ROW_BO], vec[ROW_G_MHA], vec[ROW_B_MHA]
        g1, b1, b_f2 = vec[ROW_G1], vec[ROW_B1], vec[ROW_BF2]
        g_ff, b_ff, g2, b2 = vec[ROW_G_FF], vec[ROW_B_FF], vec[ROW_G2], vec[ROW_B2]

        xb = x.astype(bf)
        qkv = jnp.einsum("bse,ek->bsk", xb, wqkv, preferred_element_type=f32) + b_qkv
        q = qkv[..., :HDK].reshape(B, S, N_HEADS, D_K)
        k = qkv[..., HDK:2 * HDK].reshape(B, S, N_HEADS, D_K)
        v = qkv[..., 2 * HDK:].reshape(B, S, N_HEADS, D_V)
        sc = jnp.einsum("bqhd,bkhd->bhqk", q.astype(bf), k.astype(bf),
                        preferred_element_type=f32) * ATTN_SCALE
        sc = sc + bias[None, None]
        sc = sc - sc.max(-1, keepdims=True)
        p = jnp.exp(sc)
        p = p / p.sum(-1, keepdims=True)
        ctx = jnp.einsum("bhqk,bkhd->bqhd", p.astype(bf), v.astype(bf),
                         preferred_element_type=f32).reshape(B, S, HDV)
        attn = jnp.einsum("bsd,de->bse", ctx.astype(bf), params["w_o"][l],
                          preferred_element_type=f32) + bo
        attn = ln(attn + x, g_mha, b_mha)
        n1 = ln(x + attn, g1, b1)
        h1 = jnp.einsum("bse,ef->bsf", n1.astype(bf), params["w_f1"][l],
                        preferred_element_type=f32) + b_f1
        h1 = jnp.maximum(h1, 0.0)
        ff = jnp.einsum("bsf,fe->bse", h1.astype(bf), params["w_f2"][l],
                        preferred_element_type=f32) + b_f2
        ff = ln(ff + n1, g_ff, b_ff)
        x = ln(n1 + ff, g2, b2)
    return x


if __name__ == "__main__":
    B, S = 2, 8
    VOCAB_SIZE, MAX_SEQ_LEN = 32, 8

    key = jax.random.PRNGKey(0)
    k_tok, k_par = jax.random.split(key)
    dec_inputs = jax.random.randint(k_tok, (B, S), 0, VOCAB_SIZE, dtype=jnp.int32)
    params = init_decoder_params(k_par, VOCAB_SIZE, MAX_SEQ_LEN)

    out = jax.block_until_ready(decoder_forward(params, dec_inputs))
    ref = _ref_forward(params, dec_inputs)

    assert out.shape == (B, S, D_EMB)
    # Tolerance accounts for the approximate EUP reciprocal in the softmax.
    assert jnp.allclose(out, ref, atol=1e-2, rtol=1e-2), "Pallas output mismatch vs reference"

    print("KERNEL_OK")
</pallas_src>

<mosaic_0001>
module attributes {stable_mosaic.version = 11 : i64} {
  func.func @decoder_stack_kernel(%arg0: i32, %arg1: memref<1x8x128xf32, #tpu.memory_space<vmem>>, %arg2: memref<2x128x384xbf16, #tpu.memory_space<vmem>>, %arg3: memref<2x128x128xbf16, #tpu.memory_space<vmem>>, %arg4: memref<2x128x256xbf16, #tpu.memory_space<vmem>>, %arg5: memref<2x256x128xbf16, #tpu.memory_space<vmem>>, %arg6: memref<2x8x384xf32, #tpu.memory_space<vmem>>, %arg7: memref<2x16x128xf32, #tpu.memory_space<vmem>>, %arg8: memref<1x8x128xf32, #tpu.memory_space<vmem>>) attributes {dimension_semantics = [#tpu.dimension_semantics<parallel>], iteration_bounds = array<i64: 2>, scalar_prefetch = 0 : i64, scratch_operands = 0 : i64, tpu.core_type = #tpu.core_type<tc>, window_params = [{transform_indices = @transform_0, window_bounds = array<i64: 1, 8, 128>}, {pipeline_mode = #tpu.pipeline_mode<synchronous>, transform_indices = @transform_1, window_bounds = array<i64: 2, 128, 384>}, {pipeline_mode = #tpu.pipeline_mode<synchronous>, transform_indices = @transform_2, window_bounds = array<i64: 2, 128, 128>}, {pipeline_mode = #tpu.pipeline_mode<synchronous>, transform_indices = @transform_3, window_bounds = array<i64: 2, 128, 256>}, {pipeline_mode = #tpu.pipeline_mode<synchronous>, transform_indices = @transform_4, window_bounds = array<i64: 2, 256, 128>}, {pipeline_mode = #tpu.pipeline_mode<synchronous>, transform_indices = @transform_5, window_bounds = array<i64: 2, 8, 384>}, {pipeline_mode = #tpu.pipeline_mode<synchronous>, transform_indices = @transform_6, window_bounds = array<i64: 2, 16, 128>}, {transform_indices = @transform_7, window_bounds = array<i64: 1, 8, 128>}]} {
    %c0 = arith.constant 0 : index
    %c0_0 = arith.constant 0 : index
    %c0_1 = arith.constant 0 : index
    %0 = vector.load %arg1[%c0, %c0_0, %c0_1] : memref<1x8x128xf32, #tpu.memory_space<vmem>>, vector<1x8x128xf32>
    %1 = vector.shape_cast %0 : vector<1x8x128xf32> to vector<8x128xf32>
    %2 = tpu.iota {dimensions = array<i32: 0>} : vector<8x8xi32>
    %3 = tpu.iota {dimensions = array<i32: 1>} : vector<8x8xi32>
    %4 = arith.cmpi sle, %3, %2 : vector<8x8xi32>
    %cst = arith.constant 0.000000e+00 : f32
    %cst_2 = arith.constant -1.000000e+09 : f32
    %5 = vector.broadcast %cst : f32 to vector<8x8xf32>
    %6 = vector.broadcast %cst_2 : f32 to vector<8x8xf32>
    %7 = arith.select %4, %5, %6 : vector<8x8xi1>, vector<8x8xf32>
    %c0_3 = arith.constant 0 : index
    %c0_4 = arith.constant 0 : index
    %c0_5 = arith.constant 0 : index
    %8 = vector.load %arg6[%c0_3, %c0_4, %c0_5] : memref<2x8x384xf32, #tpu.memory_space<vmem>>, vector<1x8x384xf32>
    %9 = vector.shape_cast %8 : vector<1x8x384xf32> to vector<8x384xf32>
    %c0_6 = arith.constant 0 : index
    %c0_7 = arith.constant 0 : index
    %c0_8 = arith.constant 0 : index
    %10 = vector.load %arg7[%c0_6, %c0_7, %c0_8] : memref<2x16x128xf32, #tpu.memory_space<vmem>>, vector<1x16x128xf32>
    %11 = vector.shape_cast %10 : vector<1x16x128xf32> to vector<16x128xf32>
    %12 = vector.extract_strided_slice %9 {offsets = [0, 0], sizes = [1, 384], strides = [1, 1]} : vector<8x384xf32> to vector<1x384xf32>
    %13 = vector.extract_strided_slice %9 {offsets = [1, 0], sizes = [1, 256], strides = [1, 1]} : vector<8x384xf32> to vector<1x256xf32>
    %14 = vector.extract_strided_slice %11 {offsets = [0, 0], sizes = [1, 128], strides = [1, 1]} : vector<16x128xf32> to vector<1x128xf32>
    %15 = vector.extract_strided_slice %11 {offsets = [1, 0], sizes = [1, 128], strides = [1, 1]} : vector<16x128xf32> to vector<1x128xf32>
    %16 = vector.extract_strided_slice %11 {offsets = [2, 0], sizes = [1, 128], strides = [1, 1]} : vector<16x128xf32> to vector<1x128xf32>
    %17 = vector.extract_strided_slice %11 {offsets = [3, 0], sizes = [1, 128], strides = [1, 1]} : vector<16x128xf32> to vector<1x128xf32>
    %18 = vector.extract_strided_slice %11 {offsets = [4, 0], sizes = [1, 128], strides = [1, 1]} : vector<16x128xf32> to vector<1x128xf32>
    %19 = vector.extract_strided_slice %11 {offsets = [5, 0], sizes = [1, 128], strides = [1, 1]} : vector<16x128xf32> to vector<1x128xf32>
    %20 = vector.extract_strided_slice %11 {offsets = [6, 0], sizes = [1, 128], strides = [1, 1]} : vector<16x128xf32> to vector<1x128xf32>
    %21 = vector.extract_strided_slice %11 {offsets = [7, 0], sizes = [1, 128], strides = [1, 1]} : vector<16x128xf32> to vector<1x128xf32>
    %22 = vector.extract_strided_slice %11 {offsets = [8, 0], sizes = [1, 128], strides = [1, 1]} : vector<16x128xf32> to vector<1x128xf32>
    %23 = vector.extract_strided_slice %11 {offsets = [9, 0], sizes = [1, 128], strides = [1, 1]} : vector<16x128xf32> to vector<1x128xf32>
    %24 = arith.truncf %1 : vector<8x128xf32> to vector<8x128xbf16>
    %c0_9 = arith.constant 0 : index
    %c0_10 = arith.constant 0 : index
    %c0_11 = arith.constant 0 : index
    %25 = vector.load %arg2[%c0_9, %c0_10, %c0_11] : memref<2x128x384xbf16, #tpu.memory_space<vmem>>, vector<1x128x384xbf16>
    %26 = vector.shape_cast %25 : vector<1x128x384xbf16> to vector<128x384xbf16>
    %cst_12 = arith.constant dense<0.000000e+00> : vector<8x384xf32>
    %27 = tpu.matmul %24, %26, %cst_12 {dimension_numbers = #tpu.dot_dimension_numbers<[1], [0], [0], [1], [0, 0, 1, 1], [], []>} : vector<8x128xbf16>, vector<128x384xbf16>, vector<8x384xf32> -> vector<8x384xf32>
    %28 = vector.broadcast %12 : vector<1x384xf32> to vector<8x384xf32>
    %29 = arith.addf %27, %28 : vector<8x384xf32>
    %30 = vector.extract_strided_slice %29 {offsets = [0, 0], sizes = [8, 32], strides = [1, 1]} : vector<8x384xf32> to vector<8x32xf32>
    %31 = arith.truncf %30 : vector<8x32xf32> to vector<8x32xbf16>
    %32 = vector.extract_strided_slice %29 {offsets = [0, 128], sizes = [8, 32], strides = [1, 1]} : vector<8x384xf32> to vector<8x32xf32>
    %33 = arith.truncf %32 : vector<8x32xf32> to vector<8x32xbf16>
    %34 = vector.extract_strided_slice %29 {offsets = [0, 256], sizes = [8, 32], strides = [1, 1]} : vector<8x384xf32> to vector<8x32xf32>
    %35 = arith.truncf %34 : vector<8x32xf32> to vector<8x32xbf16>
    %cst_13 = arith.constant dense<0.000000e+00> : vector<8x8xf32>
    %36 = tpu.matmul %31, %33, %cst_13 {dimension_numbers = #tpu.dot_dimension_numbers<[1], [1], [0], [0], [0, 0, 1, 0], [], []>} : vector<8x32xbf16>, vector<8x32xbf16>, vector<8x8xf32> -> vector<8x8xf32>
    %cst_14 = arith.constant 0.176776692 : f32
    %37 = vector.broadcast %cst_14 : f32 to vector<8x8xf32>
    %38 = arith.mulf %36, %37 : vector<8x8xf32>
    %39 = arith.addf %38, %7 : vector<8x8xf32>
    %cst_15 = arith.constant dense<0xFF800000> : vector<8xf32>
    %40 = vector.multi_reduction <maximumf>, %39, %cst_15 [1] : vector<8x8xf32> to vector<8xf32>
    %41 = vector.shape_cast %40 : vector<8xf32> to vector<8x1xf32>
    %42 = vector.broadcast %41 : vector<8x1xf32> to vector<8x8xf32>
    %43 = arith.subf %39, %42 : vector<8x8xf32>
    %44 = math.exp %43 : vector<8x8xf32>
    %cst_16 = arith.constant dense<0.000000e+00> : vector<8xf32>
    %45 = vector.multi_reduction <add>, %44, %cst_16 [1] : vector<8x8xf32> to vector<8xf32>
    %46 = vector.shape_cast %45 : vector<8xf32> to vector<8x1xf32>
    %47 = tpu.reciprocal %46 {approx = true} : vector<8x1xf32> -> vector<8x1xf32>
    %48 = vector.broadcast %47 : vector<8x1xf32> to vector<8x8xf32>
    %49 = arith.mulf %44, %48 : vector<8x8xf32>
    %50 = arith.truncf %49 : vector<8x8xf32> to vector<8x8xbf16>
    %cst_17 = arith.constant dense<0.000000e+00> : vector<8x32xf32>
    %51 = tpu.matmul %50, %35, %cst_17 {dimension_numbers = #tpu.dot_dimension_numbers<[1], [0], [0], [1], [0, 0, 1, 1], [], []>} : vector<8x8xbf16>, vector<8x32xbf16>, vector<8x32xf32> -> vector<8x32xf32>
    %52 = vector.extract_strided_slice %29 {offsets = [0, 32], sizes = [8, 32], strides = [1, 1]} : vector<8x384xf32> to vector<8x32xf32>
    %53 = arith.truncf %52 : vector<8x32xf32> to vector<8x32xbf16>
    %54 = vector.extract_strided_slice %29 {offsets = [0, 160], sizes = [8, 32], strides = [1, 1]} : vector<8x384xf32> to vector<8x32xf32>
    %55 = arith.truncf %54 : vector<8x32xf32> to vector<8x32xbf16>
    %56 = vector.extract_strided_slice %29 {offsets = [0, 288], sizes = [8, 32], strides = [1, 1]} : vector<8x384xf32> to vector<8x32xf32>
    %57 = arith.truncf %56 : vector<8x32xf32> to vector<8x32xbf16>
    %cst_18 = arith.constant dense<0.000000e+00> : vector<8x8xf32>
    %58 = tpu.matmul %53, %55, %cst_18 {dimension_numbers = #tpu.dot_dimension_numbers<[1], [1], [0], [0], [0, 0, 1, 0], [], []>} : vector<8x32xbf16>, vector<8x32xbf16>, vector<8x8xf32> -> vector<8x8xf32>
    %cst_19 = arith.constant 0.176776692 : f32
    %59 = vector.broadcast %cst_19 : f32 to vector<8x8xf32>
    %60 = arith.mulf %58, %59 : vector<8x8xf32>
    %61 = arith.addf %60, %7 : vector<8x8xf32>
    %cst_20 = arith.constant dense<0xFF800000> : vector<8xf32>
    %62 = vector.multi_reduction <maximumf>, %61, %cst_20 [1] : vector<8x8xf32> to vector<8xf32>
    %63 = vector.shape_cast %62 : vector<8xf32> to vector<8x1xf32>
    %64 = vector.broadcast %63 : vector<8x1xf32> to vector<8x8xf32>
    %65 = arith.subf %61, %64 : vector<8x8xf32>
    %66 = math.exp %65 : vector<8x8xf32>
    %cst_21 = arith.constant dense<0.000000e+00> : vector<8xf32>
    %67 = vector.multi_reduction <add>, %66, %cst_21 [1] : vector<8x8xf32> to vector<8xf32>
    %68 = vector.shape_cast %67 : vector<8xf32> to vector<8x1xf32>
    %69 = tpu.reciprocal %68 {approx = true} : vector<8x1xf32> -> vector<8x1xf32>
    %70 = vector.broadcast %69 : vector<8x1xf32> to vector<8x8xf32>
    %71 = arith.mulf %66, %70 : vector<8x8xf32>
    %72 = arith.truncf %71 : vector<8x8xf32> to vector<8x8xbf16>
    %cst_22 = arith.constant dense<0.000000e+00> : vector<8x32xf32>
    %73 = tpu.matmul %72, %57, %cst_22 {dimension_numbers = #tpu.dot_dimension_numbers<[1], [0], [0], [1], [0, 0, 1, 1], [], []>} : vector<8x8xbf16>, vector<8x32xbf16>, vector<8x32xf32> -> vector<8x32xf32>
    %74 = vector.extract_strided_slice %29 {offsets = [0, 64], sizes = [8, 32], strides = [1, 1]} : vector<8x384xf32> to vector<8x32xf32>
    %75 = arith.truncf %74 : vector<8x32xf32> to vector<8x32xbf16>
    %76 = vector.extract_strided_slice %29 {offsets = [0, 192], sizes = [8, 32], strides = [1, 1]} : vector<8x384xf32> to vector<8x32xf32>
    %77 = arith.truncf %76 : vector<8x32xf32> to vector<8x32xbf16>
    %78 = vector.extract_strided_slice %29 {offsets = [0, 320], sizes = [8, 32], strides = [1, 1]} : vector<8x384xf32> to vector<8x32xf32>
    %79 = arith.truncf %78 : vector<8x32xf32> to vector<8x32xbf16>
    %cst_23 = arith.constant dense<0.000000e+00> : vector<8x8xf32>
    %80 = tpu.matmul %75, %77, %cst_23 {dimension_numbers = #tpu.dot_dimension_numbers<[1], [1], [0], [0], [0, 0, 1, 0], [], []>} : vector<8x32xbf16>, vector<8x32xbf16>, vector<8x8xf32> -> vector<8x8xf32>
    %cst_24 = arith.constant 0.176776692 : f32
    %81 = vector.broadcast %cst_24 : f32 to vector<8x8xf32>
    %82 = arith.mulf %80, %81 : vector<8x8xf32>
    %83 = arith.addf %82, %7 : vector<8x8xf32>
    %cst_25 = arith.constant dense<0xFF800000> : vector<8xf32>
    %84 = vector.multi_reduction <maximumf>, %83, %cst_25 [1] : vector<8x8xf32> to vector<8xf32>
    %85 = vector.shape_cast %84 : vector<8xf32> to vector<8x1xf32>
    %86 = vector.broadcast %85 : vector<8x1xf32> to vector<8x8xf32>
    %87 = arith.subf %83, %86 : vector<8x8xf32>
    %88 = math.exp %87 : vector<8x8xf32>
    %cst_26 = arith.constant dense<0.000000e+00> : vector<8xf32>
    %89 = vector.multi_reduction <add>, %88, %cst_26 [1] : vector<8x8xf32> to vector<8xf32>
    %90 = vector.shape_cast %89 : vector<8xf32> to vector<8x1xf32>
    %91 = tpu.reciprocal %90 {approx = true} : vector<8x1xf32> -> vector<8x1xf32>
    %92 = vector.broadcast %91 : vector<8x1xf32> to vector<8x8xf32>
    %93 = arith.mulf %88, %92 : vector<8x8xf32>
    %94 = arith.truncf %93 : vector<8x8xf32> to vector<8x8xbf16>
    %cst_27 = arith.constant dense<0.000000e+00> : vector<8x32xf32>
    %95 = tpu.matmul %94, %79, %cst_27 {dimension_numbers = #tpu.dot_dimension_numbers<[1], [0], [0], [1], [0, 0, 1, 1], [], []>} : vector<8x8xbf16>, vector<8x32xbf16>, vector<8x32xf32> -> vector<8x32xf32>
    %96 = vector.extract_strided_slice %29 {offsets = [0, 96], sizes = [8, 32], strides = [1, 1]} : vector<8x384xf32> to vector<8x32xf32>
    %97 = arith.truncf %96 : vector<8x32xf32> to vector<8x32xbf16>
    %98 = vector.extract_strided_slice %29 {offsets = [0, 224], sizes = [8, 32], strides = [1, 1]} : vector<8x384xf32> to vector<8x32xf32>
    %99 = arith.truncf %98 : vector<8x32xf32> to vector<8x32xbf16>
    %100 = vector.extract_strided_slice %29 {offsets = [0, 352], sizes = [8, 32], strides = [1, 1]} : vector<8x384xf32> to vector<8x32xf32>
    %101 = arith.truncf %100 : vector<8x32xf32> to vector<8x32xbf16>
    %cst_28 = arith.constant dense<0.000000e+00> : vector<8x8xf32>
    %102 = tpu.matmul %97, %99, %cst_28 {dimension_numbers = #tpu.dot_dimension_numbers<[1], [1], [0], [0], [0, 0, 1, 0], [], []>} : vector<8x32xbf16>, vector<8x32xbf16>, vector<8x8xf32> -> vector<8x8xf32>
    %cst_29 = arith.constant 0.176776692 : f32
    %103 = vector.broadcast %cst_29 : f32 to vector<8x8xf32>
    %104 = arith.mulf %102, %103 : vector<8x8xf32>
    %105 = arith.addf %104, %7 : vector<8x8xf32>
    %cst_30 = arith.constant dense<0xFF800000> : vector<8xf32>
    %106 = vector.multi_reduction <maximumf>, %105, %cst_30 [1] : vector<8x8xf32> to vector<8xf32>
    %107 = vector.shape_cast %106 : vector<8xf32> to vector<8x1xf32>
    %108 = vector.broadcast %107 : vector<8x1xf32> to vector<8x8xf32>
    %109 = arith.subf %105, %108 : vector<8x8xf32>
    %110 = math.exp %109 : vector<8x8xf32>
    %cst_31 = arith.constant dense<0.000000e+00> : vector<8xf32>
    %111 = vector.multi_reduction <add>, %110, %cst_31 [1] : vector<8x8xf32> to vector<8xf32>
    %112 = vector.shape_cast %111 : vector<8xf32> to vector<8x1xf32>
    %113 = tpu.reciprocal %112 {approx = true} : vector<8x1xf32> -> vector<8x1xf32>
    %114 = vector.broadcast %113 : vector<8x1xf32> to vector<8x8xf32>
    %115 = arith.mulf %110, %114 : vector<8x8xf32>
    %116 = arith.truncf %115 : vector<8x8xf32> to vector<8x8xbf16>
    %cst_32 = arith.constant dense<0.000000e+00> : vector<8x32xf32>
    %117 = tpu.matmul %116, %101, %cst_32 {dimension_numbers = #tpu.dot_dimension_numbers<[1], [0], [0], [1], [0, 0, 1, 1], [], []>} : vector<8x8xbf16>, vector<8x32xbf16>, vector<8x32xf32> -> vector<8x32xf32>
    %118 = tpu.concatenate %51, %73, %95, %117 in 1 : vector<8x32xf32>, vector<8x32xf32>, vector<8x32xf32>, vector<8x32xf32> -> vector<8x128xf32>
    %119 = arith.truncf %118 : vector<8x128xf32> to vector<8x128xbf16>
    %c0_33 = arith.constant 0 : index
    %c0_34 = arith.constant 0 : index
    %c0_35 = arith.constant 0 : index
    %120 = vector.load %arg3[%c0_33, %c0_34, %c0_35] : memref<2x128x128xbf16, #tpu.memory_space<vmem>>, vector<1x128x128xbf16>
    %121 = vector.shape_cast %120 : vector<1x128x128xbf16> to vector<128x128xbf16>
    %cst_36 = arith.constant dense<0.000000e+00> : vector<8x128xf32>
    %122 = tpu.matmul %119, %121, %cst_36 {dimension_numbers = #tpu.dot_dimension_numbers<[1], [0], [0], [1], [0, 0, 1, 1], [], []>} : vector<8x128xbf16>, vector<128x128xbf16>, vector<8x128xf32> -> vector<8x128xf32>
    %123 = vector.broadcast %14 : vector<1x128xf32> to vector<8x128xf32>
    %124 = arith.addf %122, %123 : vector<8x128xf32>
    %125 = arith.addf %124, %1 : vector<8x128xf32>
    %cst_37 = arith.constant dense<0.000000e+00> : vector<8xf32>
    %126 = vector.multi_reduction <add>, %125, %cst_37 [1] : vector<8x128xf32> to vector<8xf32>
    %127 = vector.shape_cast %126 : vector<8xf32> to vector<8x1xf32>
    %cst_38 = arith.constant 1.280000e+02 : f32
    %128 = vector.broadcast %cst_38 : f32 to vector<8x1xf32>
    %129 = arith.divf %127, %128 : vector<8x1xf32>
    %130 = vector.broadcast %129 : vector<8x1xf32> to vector<8x128xf32>
    %131 = arith.subf %125, %130 : vector<8x128xf32>
    %132 = arith.mulf %131, %131 : vector<8x128xf32>
    %cst_39 = arith.constant dense<0.000000e+00> : vector<8xf32>
    %133 = vector.multi_reduction <add>, %132, %cst_39 [1] : vector<8x128xf32> to vector<8xf32>
    %134 = vector.shape_cast %133 : vector<8xf32> to vector<8x1xf32>
    %cst_40 = arith.constant 1.280000e+02 : f32
    %135 = vector.broadcast %cst_40 : f32 to vector<8x1xf32>
    %136 = arith.divf %134, %135 : vector<8x1xf32>
    %137 = vector.broadcast %129 : vector<8x1xf32> to vector<8x128xf32>
    %138 = arith.subf %125, %137 : vector<8x128xf32>
    %cst_41 = arith.constant 9.99999974E-6 : f32
    %139 = vector.broadcast %cst_41 : f32 to vector<8x1xf32>
    %140 = arith.addf %136, %139 : vector<8x1xf32>
    %141 = math.rsqrt %140 : vector<8x1xf32>
    %142 = vector.broadcast %141 : vector<8x1xf32> to vector<8x128xf32>
    %143 = arith.mulf %138, %142 : vector<8x128xf32>
    %144 = vector.broadcast %15 : vector<1x128xf32> to vector<8x128xf32>
    %145 = arith.mulf %143, %144 : vector<8x128xf32>
    %146 = vector.broadcast %16 : vector<1x128xf32> to vector<8x128xf32>
    %147 = arith.addf %145, %146 : vector<8x128xf32>
    %148 = arith.addf %1, %147 : vector<8x128xf32>
    %cst_42 = arith.constant dense<0.000000e+00> : vector<8xf32>
    %149 = vector.multi_reduction <add>, %148, %cst_42 [1] : vector<8x128xf32> to vector<8xf32>
    %150 = vector.shape_cast %149 : vector<8xf32> to vector<8x1xf32>
    %cst_43 = arith.constant 1.280000e+02 : f32
    %151 = vector.broadcast %cst_43 : f32 to vector<8x1xf32>
    %152 = arith.divf %150, %151 : vector<8x1xf32>
    %153 = vector.broadcast %152 : vector<8x1xf32> to vector<8x128xf32>
    %154 = arith.subf %148, %153 : vector<8x128xf32>
    %155 = arith.mulf %154, %154 : vector<8x128xf32>
    %cst_44 = arith.constant dense<0.000000e+00> : vector<8xf32>
    %156 = vector.multi_reduction <add>, %155, %cst_44 [1] : vector<8x128xf32> to vector<8xf32>
    %157 = vector.shape_cast %156 : vector<8xf32> to vector<8x1xf32>
    %cst_45 = arith.constant 1.280000e+02 : f32
    %158 = vector.broadcast %cst_45 : f32 to vector<8x1xf32>
    %159 = arith.divf %157, %158 : vector<8x1xf32>
    %160 = vector.broadcast %152 : vector<8x1xf32> to vector<8x128xf32>
    %161 = arith.subf %148, %160 : vector<8x128xf32>
    %cst_46 = arith.constant 9.99999974E-6 : f32
    %162 = vector.broadcast %cst_46 : f32 to vector<8x1xf32>
    %163 = arith.addf %159, %162 : vector<8x1xf32>
    %164 = math.rsqrt %163 : vector<8x1xf32>
    %165 = vector.broadcast %164 : vector<8x1xf32> to vector<8x128xf32>
    %166 = arith.mulf %161, %165 : vector<8x128xf32>
    %167 = vector.broadcast %17 : vector<1x128xf32> to vector<8x128xf32>
    %168 = arith.mulf %166, %167 : vector<8x128xf32>
    %169 = vector.broadcast %18 : vector<1x128xf32> to vector<8x128xf32>
    %170 = arith.addf %168, %169 : vector<8x128xf32>
    %171 = arith.truncf %170 : vector<8x128xf32> to vector<8x128xbf16>
    %c0_47 = arith.constant 0 : index
    %c0_48 = arith.constant 0 : index
    %c0_49 = arith.constant 0 : index
    %172 = vector.load %arg4[%c0_47, %c0_48, %c0_49] : memref<2x128x256xbf16, #tpu.memory_space<vmem>>, vector<1x128x256xbf16>
    %173 = vector.shape_cast %172 : vector<1x128x256xbf16> to vector<128x256xbf16>
    %cst_50 = arith.constant dense<0.000000e+00> : vector<8x256xf32>
    %174 = tpu.matmul %171, %173, %cst_50 {dimension_numbers = #tpu.dot_dimension_numbers<[1], [0], [0], [1], [0, 0, 1, 1], [], []>} : vector<8x128xbf16>, vector<128x256xbf16>, vector<8x256xf32> -> vector<8x256xf32>
    %175 = vector.broadcast %13 : vector<1x256xf32> to vector<8x256xf32>
    %176 = arith.addf %174, %175 : vector<8x256xf32>
    %cst_51 = arith.constant 0.000000e+00 : f32
    %177 = vector.broadcast %cst_51 : f32 to vector<8x256xf32>
    %178 = arith.maximumf %176, %177 : vector<8x256xf32>
    %179 = arith.truncf %178 : vector<8x256xf32> to vector<8x256xbf16>
    %c0_52 = arith.constant 0 : index
    %c0_53 = arith.constant 0 : index
    %c0_54 = arith.constant 0 : index
    %180 = vector.load %arg5[%c0_52, %c0_53, %c0_54] : memref<2x256x128xbf16, #tpu.memory_space<vmem>>, vector<1x256x128xbf16>
    %181 = vector.shape_cast %180 : vector<1x256x128xbf16> to vector<256x128xbf16>
    %cst_55 = arith.constant dense<0.000000e+00> : vector<8x128xf32>
    %182 = tpu.matmul %179, %181, %cst_55 {dimension_numbers = #tpu.dot_dimension_numbers<[1], [0], [0], [1], [0, 0, 1, 1], [], []>} : vector<8x256xbf16>, vector<256x128xbf16>, vector<8x128xf32> -> vector<8x128xf32>
    %183 = vector.broadcast %19 : vector<1x128xf32> to vector<8x128xf32>
    %184 = arith.addf %182, %183 : vector<8x128xf32>
    %185 = arith.addf %184, %170 : vector<8x128xf32>
    %cst_56 = arith.constant dense<0.000000e+00> : vector<8xf32>
    %186 = vector.multi_reduction <add>, %185, %cst_56 [1] : vector<8x128xf32> to vector<8xf32>
    %187 = vector.shape_cast %186 : vector<8xf32> to vector<8x1xf32>
    %cst_57 = arith.constant 1.280000e+02 : f32
    %188 = vector.broadcast %cst_57 : f32 to vector<8x1xf32>
    %189 = arith.divf %187, %188 : vector<8x1xf32>
    %190 = vector.broadcast %189 : vector<8x1xf32> to vector<8x128xf32>
    %191 = arith.subf %185, %190 : vector<8x128xf32>
    %192 = arith.mulf %191, %191 : vector<8x128xf32>
    %cst_58 = arith.constant dense<0.000000e+00> : vector<8xf32>
    %193 = vector.multi_reduction <add>, %192, %cst_58 [1] : vector<8x128xf32> to vector<8xf32>
    %194 = vector.shape_cast %193 : vector<8xf32> to vector<8x1xf32>
    %cst_59 = arith.constant 1.280000e+02 : f32
    %195 = vector.broadcast %cst_59 : f32 to vector<8x1xf32>
    %196 = arith.divf %194, %195 : vector<8x1xf32>
    %197 = vector.broadcast %189 : vector<8x1xf32> to vector<8x128xf32>
    %198 = arith.subf %185, %197 : vector<8x128xf32>
    %cst_60 = arith.constant 9.99999974E-6 : f32
    %199 = vector.broadcast %cst_60 : f32 to vector<8x1xf32>
    %200 = arith.addf %196, %199 : vector<8x1xf32>
    %201 = math.rsqrt %200 : vector<8x1xf32>
    %202 = vector.broadcast %201 : vector<8x1xf32> to vector<8x128xf32>
    %203 = arith.mulf %198, %202 : vector<8x128xf32>
    %204 = vector.broadcast %20 : vector<1x128xf32> to vector<8x128xf32>
    %205 = arith.mulf %203, %204 : vector<8x128xf32>
    %206 = vector.broadcast %21 : vector<1x128xf32> to vector<8x128xf32>
    %207 = arith.addf %205, %206 : vector<8x128xf32>
    %208 = arith.addf %170, %207 : vector<8x128xf32>
    %cst_61 = arith.constant dense<0.000000e+00> : vector<8xf32>
    %209 = vector.multi_reduction <add>, %208, %cst_61 [1] : vector<8x128xf32> to vector<8xf32>
    %210 = vector.shape_cast %209 : vector<8xf32> to vector<8x1xf32>
    %cst_62 = arith.constant 1.280000e+02 : f32
    %211 = vector.broadcast %cst_62 : f32 to vector<8x1xf32>
    %212 = arith.divf %210, %211 : vector<8x1xf32>
    %213 = vector.broadcast %212 : vector<8x1xf32> to vector<8x128xf32>
    %214 = arith.subf %208, %213 : vector<8x128xf32>
    %215 = arith.mulf %214, %214 : vector<8x128xf32>
    %cst_63 = arith.constant dense<0.000000e+00> : vector<8xf32>
    %216 = vector.multi_reduction <add>, %215, %cst_63 [1] : vector<8x128xf32> to vector<8xf32>
    %217 = vector.shape_cast %216 : vector<8xf32> to vector<8x1xf32>
    %cst_64 = arith.constant 1.280000e+02 : f32
    %218 = vector.broadcast %cst_64 : f32 to vector<8x1xf32>
    %219 = arith.divf %217, %218 : vector<8x1xf32>
    %220 = vector.broadcast %212 : vector<8x1xf32> to vector<8x128xf32>
    %221 = arith.subf %208, %220 : vector<8x128xf32>
    %cst_65 = arith.constant 9.99999974E-6 : f32
    %222 = vector.broadcast %cst_65 : f32 to vector<8x1xf32>
    %223 = arith.addf %219, %222 : vector<8x1xf32>
    %224 = math.rsqrt %223 : vector<8x1xf32>
    %225 = vector.broadcast %224 : vector<8x1xf32> to vector<8x128xf32>
    %226 = arith.mulf %221, %225 : vector<8x128xf32>
    %227 = vector.broadcast %22 : vector<1x128xf32> to vector<8x128xf32>
    %228 = arith.mulf %226, %227 : vector<8x128xf32>
    %229 = vector.broadcast %23 : vector<1x128xf32> to vector<8x128xf32>
    %230 = arith.addf %228, %229 : vector<8x128xf32>
    %c1 = arith.constant 1 : index
    %c0_66 = arith.constant 0 : index
    %c0_67 = arith.constant 0 : index
    %231 = vector.load %arg6[%c1, %c0_66, %c0_67] : memref<2x8x384xf32, #tpu.memory_space<vmem>>, vector<1x8x384xf32>
    %232 = vector.shape_cast %231 : vector<1x8x384xf32> to vector<8x384xf32>
    %c1_68 = arith.constant 1 : index
    %c0_69 = arith.constant 0 : index
    %c0_70 = arith.constant 0 : index
    %233 = vector.load %arg7[%c1_68, %c0_69, %c0_70] : memref<2x16x128xf32, #tpu.memory_space<vmem>>, vector<1x16x128xf32>
    %234 = vector.shape_cast %233 : vector<1x16x128xf32> to vector<16x128xf32>
    %235 = vector.extract_strided_slice %232 {offsets = [0, 0], sizes = [1, 384], strides = [1, 1]} : vector<8x384xf32> to vector<1x384xf32>
    %236 = vector.extract_strided_slice %232 {offsets = [1, 0], sizes = [1, 256], strides = [1, 1]} : vector<8x384xf32> to vector<1x256xf32>
    %237 = vector.extract_strided_slice %234 {offsets = [0, 0], sizes = [1, 128], strides = [1, 1]} : vector<16x128xf32> to vector<1x128xf32>
    %238 = vector.extract_strided_slice %234 {offsets = [1, 0], sizes = [1, 128], strides = [1, 1]} : vector<16x128xf32> to vector<1x128xf32>
    %239 = vector.extract_strided_slice %234 {offsets = [2, 0], sizes = [1, 128], strides = [1, 1]} : vector<16x128xf32> to vector<1x128xf32>
    %240 = vector.extract_strided_slice %234 {offsets = [3, 0], sizes = [1, 128], strides = [1, 1]} : vector<16x128xf32> to vector<1x128xf32>
    %241 = vector.extract_strided_slice %234 {offsets = [4, 0], sizes = [1, 128], strides = [1, 1]} : vector<16x128xf32> to vector<1x128xf32>
    %242 = vector.extract_strided_slice %234 {offsets = [5, 0], sizes = [1, 128], strides = [1, 1]} : vector<16x128xf32> to vector<1x128xf32>
    %243 = vector.extract_strided_slice %234 {offsets = [6, 0], sizes = [1, 128], strides = [1, 1]} : vector<16x128xf32> to vector<1x128xf32>
    %244 = vector.extract_strided_slice %234 {offsets = [7, 0], sizes = [1, 128], strides = [1, 1]} : vector<16x128xf32> to vector<1x128xf32>
    %245 = vector.extract_strided_slice %234 {offsets = [8, 0], sizes = [1, 128], strides = [1, 1]} : vector<16x128xf32> to vector<1x128xf32>
    %246 = vector.extract_strided_slice %234 {offsets = [9, 0], sizes = [1, 128], strides = [1, 1]} : vector<16x128xf32> to vector<1x128xf32>
    %247 = arith.truncf %230 : vector<8x128xf32> to vector<8x128xbf16>
    %c1_71 = arith.constant 1 : index
    %c0_72 = arith.constant 0 : index
    %c0_73 = arith.constant 0 : index
    %248 = vector.load %arg2[%c1_71, %c0_72, %c0_73] : memref<2x128x384xbf16, #tpu.memory_space<vmem>>, vector<1x128x384xbf16>
    %249 = vector.shape_cast %248 : vector<1x128x384xbf16> to vector<128x384xbf16>
    %cst_74 = arith.constant dense<0.000000e+00> : vector<8x384xf32>
    %250 = tpu.matmul %247, %249, %cst_74 {dimension_numbers = #tpu.dot_dimension_numbers<[1], [0], [0], [1], [0, 0, 1, 1], [], []>} : vector<8x128xbf16>, vector<128x384xbf16>, vector<8x384xf32> -> vector<8x384xf32>
    %251 = vector.broadcast %235 : vector<1x384xf32> to vector<8x384xf32>
    %252 = arith.addf %250, %251 : vector<8x384xf32>
    %253 = vector.extract_strided_slice %252 {offsets = [0, 0], sizes = [8, 32], strides = [1, 1]} : vector<8x384xf32> to vector<8x32xf32>
    %254 = arith.truncf %253 : vector<8x32xf32> to vector<8x32xbf16>
    %255 = vector.extract_strided_slice %252 {offsets = [0, 128], sizes = [8, 32], strides = [1, 1]} : vector<8x384xf32> to vector<8x32xf32>
    %256 = arith.truncf %255 : vector<8x32xf32> to vector<8x32xbf16>
    %257 = vector.extract_strided_slice %252 {offsets = [0, 256], sizes = [8, 32], strides = [1, 1]} : vector<8x384xf32> to vector<8x32xf32>
    %258 = arith.truncf %257 : vector<8x32xf32> to vector<8x32xbf16>
    %cst_75 = arith.constant dense<0.000000e+00> : vector<8x8xf32>
    %259 = tpu.matmul %254, %256, %cst_75 {dimension_numbers = #tpu.dot_dimension_numbers<[1], [1], [0], [0], [0, 0, 1, 0], [], []>} : vector<8x32xbf16>, vector<8x32xbf16>, vector<8x8xf32> -> vector<8x8xf32>
    %cst_76 = arith.constant 0.176776692 : f32
    %260 = vector.broadcast %cst_76 : f32 to vector<8x8xf32>
    %261 = arith.mulf %259, %260 : vector<8x8xf32>
    %262 = arith.addf %261, %7 : vector<8x8xf32>
    %cst_77 = arith.constant dense<0xFF800000> : vector<8xf32>
    %263 = vector.multi_reduction <maximumf>, %262, %cst_77 [1] : vector<8x8xf32> to vector<8xf32>
    %264 = vector.shape_cast %263 : vector<8xf32> to vector<8x1xf32>
    %265 = vector.broadcast %264 : vector<8x1xf32> to vector<8x8xf32>
    %266 = arith.subf %262, %265 : vector<8x8xf32>
    %267 = math.exp %266 : vector<8x8xf32>
    %cst_78 = arith.constant dense<0.000000e+00> : vector<8xf32>
    %268 = vector.multi_reduction <add>, %267, %cst_78 [1] : vector<8x8xf32> to vector<8xf32>
    %269 = vector.shape_cast %268 : vector<8xf32> to vector<8x1xf32>
    %270 = tpu.reciprocal %269 {approx = true} : vector<8x1xf32> -> vector<8x1xf32>
    %271 = vector.broadcast %270 : vector<8x1xf32> to vector<8x8xf32>
    %272 = arith.mulf %267, %271 : vector<8x8xf32>
    %273 = arith.truncf %272 : vector<8x8xf32> to vector<8x8xbf16>
    %cst_79 = arith.constant dense<0.000000e+00> : vector<8x32xf32>
    %274 = tpu.matmul %273, %258, %cst_79 {dimension_numbers = #tpu.dot_dimension_numbers<[1], [0], [0], [1], [0, 0, 1, 1], [], []>} : vector<8x8xbf16>, vector<8x32xbf16>, vector<8x32xf32> -> vector<8x32xf32>
    %275 = vector.extract_strided_slice %252 {offsets = [0, 32], sizes = [8, 32], strides = [1, 1]} : vector<8x384xf32> to vector<8x32xf32>
    %276 = arith.truncf %275 : vector<8x32xf32> to vector<8x32xbf16>
    %277 = vector.extract_strided_slice %252 {offsets = [0, 160], sizes = [8, 32], strides = [1, 1]} : vector<8x384xf32> to vector<8x32xf32>
    %278 = arith.truncf %277 : vector<8x32xf32> to vector<8x32xbf16>
    %279 = vector.extract_strided_slice %252 {offsets = [0, 288], sizes = [8, 32], strides = [1, 1]} : vector<8x384xf32> to vector<8x32xf32>
    %280 = arith.truncf %279 : vector<8x32xf32> to vector<8x32xbf16>
    %cst_80 = arith.constant dense<0.000000e+00> : vector<8x8xf32>
    %281 = tpu.matmul %276, %278, %cst_80 {dimension_numbers = #tpu.dot_dimension_numbers<[1], [1], [0], [0], [0, 0, 1, 0], [], []>} : vector<8x32xbf16>, vector<8x32xbf16>, vector<8x8xf32> -> vector<8x8xf32>
    %cst_81 = arith.constant 0.176776692 : f32
    %282 = vector.broadcast %cst_81 : f32 to vector<8x8xf32>
    %283 = arith.mulf %281, %282 : vector<8x8xf32>
    %284 = arith.addf %283, %7 : vector<8x8xf32>
    %cst_82 = arith.constant dense<0xFF800000> : vector<8xf32>
    %285 = vector.multi_reduction <maximumf>, %284, %cst_82 [1] : vector<8x8xf32> to vector<8xf32>
    %286 = vector.shape_cast %285 : vector<8xf32> to vector<8x1xf32>
    %287 = vector.broadcast %286 : vector<8x1xf32> to vector<8x8xf32>
    %288 = arith.subf %284, %287 : vector<8x8xf32>
    %289 = math.exp %288 : vector<8x8xf32>
    %cst_83 = arith.constant dense<0.000000e+00> : vector<8xf32>
    %290 = vector.multi_reduction <add>, %289, %cst_83 [1] : vector<8x8xf32> to vector<8xf32>
    %291 = vector.shape_cast %290 : vector<8xf32> to vector<8x1xf32>
    %292 = tpu.reciprocal %291 {approx = true} : vector<8x1xf32> -> vector<8x1xf32>
    %293 = vector.broadcast %292 : vector<8x1xf32> to vector<8x8xf32>
    %294 = arith.mulf %289, %293 : vector<8x8xf32>
    %295 = arith.truncf %294 : vector<8x8xf32> to vector<8x8xbf16>
    %cst_84 = arith.constant dense<0.000000e+00> : vector<8x32xf32>
    %296 = tpu.matmul %295, %280, %cst_84 {dimension_numbers = #tpu.dot_dimension_numbers<[1], [0], [0], [1], [0, 0, 1, 1], [], []>} : vector<8x8xbf16>, vector<8x32xbf16>, vector<8x32xf32> -> vector<8x32xf32>
    %297 = vector.extract_strided_slice %252 {offsets = [0, 64], sizes = [8, 32], strides = [1, 1]} : vector<8x384xf32> to vector<8x32xf32>
    %298 = arith.truncf %297 : vector<8x32xf32> to vector<8x32xbf16>
    %299 = vector.extract_strided_slice %252 {offsets = [0, 192], sizes = [8, 32], strides = [1, 1]} : vector<8x384xf32> to vector<8x32xf32>
    %300 = arith.truncf %299 : vector<8x32xf32> to vector<8x32xbf16>
    %301 = vector.extract_strided_slice %252 {offsets = [0, 320], sizes = [8, 32], strides = [1, 1]} : vector<8x384xf32> to vector<8x32xf32>
    %302 = arith.truncf %301 : vector<8x32xf32> to vector<8x32xbf16>
    %cst_85 = arith.constant dense<0.000000e+00> : vector<8x8xf32>
    %303 = tpu.matmul %298, %300, %cst_85 {dimension_numbers = #tpu.dot_dimension_numbers<[1], [1], [0], [0], [0, 0, 1, 0], [], []>} : vector<8x32xbf16>, vector<8x32xbf16>, vector<8x8xf32> -> vector<8x8xf32>
    %cst_86 = arith.constant 0.176776692 : f32
    %304 = vector.broadcast %cst_86 : f32 to vector<8x8xf32>
    %305 = arith.mulf %303, %304 : vector<8x8xf32>
    %306 = arith.addf %305, %7 : vector<8x8xf32>
    %cst_87 = arith.constant dense<0xFF800000> : vector<8xf32>
    %307 = vector.multi_reduction <maximumf>, %306, %cst_87 [1] : vector<8x8xf32> to vector<8xf32>
    %308 = vector.shape_cast %307 : vector<8xf32> to vector<8x1xf32>
    %309 = vector.broadcast %308 : vector<8x1xf32> to vector<8x8xf32>
    %310 = arith.subf %306, %309 : vector<8x8xf32>
    %311 = math.exp %310 : vector<8x8xf32>
    %cst_88 = arith.constant dense<0.000000e+00> : vector<8xf32>
    %312 = vector.multi_reduction <add>, %311, %cst_88 [1] : vector<8x8xf32> to vector<8xf32>
    %313 = vector.shape_cast %312 : vector<8xf32> to vector<8x1xf32>
    %314 = tpu.reciprocal %313 {approx = true} : vector<8x1xf32> -> vector<8x1xf32>
    %315 = vector.broadcast %314 : vector<8x1xf32> to vector<8x8xf32>
    %316 = arith.mulf %311, %315 : vector<8x8xf32>
    %317 = arith.truncf %316 : vector<8x8xf32> to vector<8x8xbf16>
    %cst_89 = arith.constant dense<0.000000e+00> : vector<8x32xf32>
    %318 = tpu.matmul %317, %302, %cst_89 {dimension_numbers = #tpu.dot_dimension_numbers<[1], [0], [0], [1], [0, 0, 1, 1], [], []>} : vector<8x8xbf16>, vector<8x32xbf16>, vector<8x32xf32> -> vector<8x32xf32>
    %319 = vector.extract_strided_slice %252 {offsets = [0, 96], sizes = [8, 32], strides = [1, 1]} : vector<8x384xf32> to vector<8x32xf32>
    %320 = arith.truncf %319 : vector<8x32xf32> to vector<8x32xbf16>
    %321 = vector.extract_strided_slice %252 {offsets = [0, 224], sizes = [8, 32], strides = [1, 1]} : vector<8x384xf32> to vector<8x32xf32>
    %322 = arith.truncf %321 : vector<8x32xf32> to vector<8x32xbf16>
    %323 = vector.extract_strided_slice %252 {offsets = [0, 352], sizes = [8, 32], strides = [1, 1]} : vector<8x384xf32> to vector<8x32xf32>
    %324 = arith.truncf %323 : vector<8x32xf32> to vector<8x32xbf16>
    %cst_90 = arith.constant dense<0.000000e+00> : vector<8x8xf32>
    %325 = tpu.matmul %320, %322, %cst_90 {dimension_numbers = #tpu.dot_dimension_numbers<[1], [1], [0], [0], [0, 0, 1, 0], [], []>} : vector<8x32xbf16>, vector<8x32xbf16>, vector<8x8xf32> -> vector<8x8xf32>
    %cst_91 = arith.constant 0.176776692 : f32
    %326 = vector.broadcast %cst_91 : f32 to vector<8x8xf32>
    %327 = arith.mulf %325, %326 : vector<8x8xf32>
    %328 = arith.addf %327, %7 : vector<8x8xf32>
    %cst_92 = arith.constant dense<0xFF800000> : vector<8xf32>
    %329 = vector.multi_reduction <maximumf>, %328, %cst_92 [1] : vector<8x8xf32> to vector<8xf32>
    %330 = vector.shape_cast %329 : vector<8xf32> to vector<8x1xf32>
    %331 = vector.broadcast %330 : vector<8x1xf32> to vector<8x8xf32>
    %332 = arith.subf %328, %331 : vector<8x8xf32>
    %333 = math.exp %332 : vector<8x8xf32>
    %cst_93 = arith.constant dense<0.000000e+00> : vector<8xf32>
    %334 = vector.multi_reduction <add>, %333, %cst_93 [1] : vector<8x8xf32> to vector<8xf32>
    %335 = vector.shape_cast %334 : vector<8xf32> to vector<8x1xf32>
    %336 = tpu.reciprocal %335 {approx = true} : vector<8x1xf32> -> vector<8x1xf32>
    %337 = vector.broadcast %336 : vector<8x1xf32> to vector<8x8xf32>
    %338 = arith.mulf %333, %337 : vector<8x8xf32>
    %339 = arith.truncf %338 : vector<8x8xf32> to vector<8x8xbf16>
    %cst_94 = arith.constant dense<0.000000e+00> : vector<8x32xf32>
    %340 = tpu.matmul %339, %324, %cst_94 {dimension_numbers = #tpu.dot_dimension_numbers<[1], [0], [0], [1], [0, 0, 1, 1], [], []>} : vector<8x8xbf16>, vector<8x32xbf16>, vector<8x32xf32> -> vector<8x32xf32>
    %341 = tpu.concatenate %274, %296, %318, %340 in 1 : vector<8x32xf32>, vector<8x32xf32>, vector<8x32xf32>, vector<8x32xf32> -> vector<8x128xf32>
    %342 = arith.truncf %341 : vector<8x128xf32> to vector<8x128xbf16>
    %c1_95 = arith.constant 1 : index
    %c0_96 = arith.constant 0 : index
    %c0_97 = arith.constant 0 : index
    %343 = vector.load %arg3[%c1_95, %c0_96, %c0_97] : memref<2x128x128xbf16, #tpu.memory_space<vmem>>, vector<1x128x128xbf16>
    %344 = vector.shape_cast %343 : vector<1x128x128xbf16> to vector<128x128xbf16>
    %cst_98 = arith.constant dense<0.000000e+00> : vector<8x128xf32>
    %345 = tpu.matmul %342, %344, %cst_98 {dimension_numbers = #tpu.dot_dimension_numbers<[1], [0], [0], [1], [0, 0, 1, 1], [], []>} : vector<8x128xbf16>, vector<128x128xbf16>, vector<8x128xf32> -> vector<8x128xf32>
    %346 = vector.broadcast %237 : vector<1x128xf32> to vector<8x128xf32>
    %347 = arith.addf %345, %346 : vector<8x128xf32>
    %348 = arith.addf %347, %230 : vector<8x128xf32>
    %cst_99 = arith.constant dense<0.000000e+00> : vector<8xf32>
    %349 = vector.multi_reduction <add>, %348, %cst_99 [1] : vector<8x128xf32> to vector<8xf32>
    %350 = vector.shape_cast %349 : vector<8xf32> to vector<8x1xf32>
    %cst_100 = arith.constant 1.280000e+02 : f32
    %351 = vector.broadcast %cst_100 : f32 to vector<8x1xf32>
    %352 = arith.divf %350, %351 : vector<8x1xf32>
    %353 = vector.broadcast %352 : vector<8x1xf32> to vector<8x128xf32>
    %354 = arith.subf %348, %353 : vector<8x128xf32>
    %355 = arith.mulf %354, %354 : vector<8x128xf32>
    %cst_101 = arith.constant dense<0.000000e+00> : vector<8xf32>
    %356 = vector.multi_reduction <add>, %355, %cst_101 [1] : vector<8x128xf32> to vector<8xf32>
    %357 = vector.shape_cast %356 : vector<8xf32> to vector<8x1xf32>
    %cst_102 = arith.constant 1.280000e+02 : f32
    %358 = vector.broadcast %cst_102 : f32 to vector<8x1xf32>
    %359 = arith.divf %357, %358 : vector<8x1xf32>
    %360 = vector.broadcast %352 : vector<8x1xf32> to vector<8x128xf32>
    %361 = arith.subf %348, %360 : vector<8x128xf32>
    %cst_103 = arith.constant 9.99999974E-6 : f32
    %362 = vector.broadcast %cst_103 : f32 to vector<8x1xf32>
    %363 = arith.addf %359, %362 : vector<8x1xf32>
    %364 = math.rsqrt %363 : vector<8x1xf32>
    %365 = vector.broadcast %364 : vector<8x1xf32> to vector<8x128xf32>
    %366 = arith.mulf %361, %365 : vector<8x128xf32>
    %367 = vector.broadcast %238 : vector<1x128xf32> to vector<8x128xf32>
    %368 = arith.mulf %366, %367 : vector<8x128xf32>
    %369 = vector.broadcast %239 : vector<1x128xf32> to vector<8x128xf32>
    %370 = arith.addf %368, %369 : vector<8x128xf32>
    %371 = arith.addf %230, %370 : vector<8x128xf32>
    %cst_104 = arith.constant dense<0.000000e+00> : vector<8xf32>
    %372 = vector.multi_reduction <add>, %371, %cst_104 [1] : vector<8x128xf32> to vector<8xf32>
    %373 = vector.shape_cast %372 : vector<8xf32> to vector<8x1xf32>
    %cst_105 = arith.constant 1.280000e+02 : f32
    %374 = vector.broadcast %cst_105 : f32 to vector<8x1xf32>
    %375 = arith.divf %373, %374 : vector<8x1xf32>
    %376 = vector.broadcast %375 : vector<8x1xf32> to vector<8x128xf32>
    %377 = arith.subf %371, %376 : vector<8x128xf32>
    %378 = arith.mulf %377, %377 : vector<8x128xf32>
    %cst_106 = arith.constant dense<0.000000e+00> : vector<8xf32>
    %379 = vector.multi_reduction <add>, %378, %cst_106 [1] : vector<8x128xf32> to vector<8xf32>
    %380 = vector.shape_cast %379 : vector<8xf32> to vector<8x1xf32>
    %cst_107 = arith.constant 1.280000e+02 : f32
    %381 = vector.broadcast %cst_107 : f32 to vector<8x1xf32>
    %382 = arith.divf %380, %381 : vector<8x1xf32>
    %383 = vector.broadcast %375 : vector<8x1xf32> to vector<8x128xf32>
    %384 = arith.subf %371, %383 : vector<8x128xf32>
    %cst_108 = arith.constant 9.99999974E-6 : f32
    %385 = vector.broadcast %cst_108 : f32 to vector<8x1xf32>
    %386 = arith.addf %382, %385 : vector<8x1xf32>
    %387 = math.rsqrt %386 : vector<8x1xf32>
    %388 = vector.broadcast %387 : vector<8x1xf32> to vector<8x128xf32>
    %389 = arith.mulf %384, %388 : vector<8x128xf32>
    %390 = vector.broadcast %240 : vector<1x128xf32> to vector<8x128xf32>
    %391 = arith.mulf %389, %390 : vector<8x128xf32>
    %392 = vector.broadcast %241 : vector<1x128xf32> to vector<8x128xf32>
    %393 = arith.addf %391, %392 : vector<8x128xf32>
    %394 = arith.truncf %393 : vector<8x128xf32> to vector<8x128xbf16>
    %c1_109 = arith.constant 1 : index
    %c0_110 = arith.constant 0 : index
    %c0_111 = arith.constant 0 : index
    %395 = vector.load %arg4[%c1_109, %c0_110, %c0_111] : memref<2x128x256xbf16, #tpu.memory_space<vmem>>, vector<1x128x256xbf16>
    %396 = vector.shape_cast %395 : vector<1x128x256xbf16> to vector<128x256xbf16>
    %cst_112 = arith.constant dense<0.000000e+00> : vector<8x256xf32>
    %397 = tpu.matmul %394, %396, %cst_112 {dimension_numbers = #tpu.dot_dimension_numbers<[1], [0], [0], [1], [0, 0, 1, 1], [], []>} : vector<8x128xbf16>, vector<128x256xbf16>, vector<8x256xf32> -> vector<8x256xf32>
    %398 = vector.broadcast %236 : vector<1x256xf32> to vector<8x256xf32>
    %399 = arith.addf %397, %398 : vector<8x256xf32>
    %cst_113 = arith.constant 0.000000e+00 : f32
    %400 = vector.broadcast %cst_113 : f32 to vector<8x256xf32>
    %401 = arith.maximumf %399, %400 : vector<8x256xf32>
    %402 = arith.truncf %401 : vector<8x256xf32> to vector<8x256xbf16>
    %c1_114 = arith.constant 1 : index
    %c0_115 = arith.constant 0 : index
    %c0_116 = arith.constant 0 : index
    %403 = vector.load %arg5[%c1_114, %c0_115, %c0_116] : memref<2x256x128xbf16, #tpu.memory_space<vmem>>, vector<1x256x128xbf16>
    %404 = vector.shape_cast %403 : vector<1x256x128xbf16> to vector<256x128xbf16>
    %cst_117 = arith.constant dense<0.000000e+00> : vector<8x128xf32>
    %405 = tpu.matmul %402, %404, %cst_117 {dimension_numbers = #tpu.dot_dimension_numbers<[1], [0], [0], [1], [0, 0, 1, 1], [], []>} : vector<8x256xbf16>, vector<256x128xbf16>, vector<8x128xf32> -> vector<8x128xf32>
    %406 = vector.broadcast %242 : vector<1x128xf32> to vector<8x128xf32>
    %407 = arith.addf %405, %406 : vector<8x128xf32>
    %408 = arith.addf %407, %393 : vector<8x128xf32>
    %cst_118 = arith.constant dense<0.000000e+00> : vector<8xf32>
    %409 = vector.multi_reduction <add>, %408, %cst_118 [1] : vector<8x128xf32> to vector<8xf32>
    %410 = vector.shape_cast %409 : vector<8xf32> to vector<8x1xf32>
    %cst_119 = arith.constant 1.280000e+02 : f32
    %411 = vector.broadcast %cst_119 : f32 to vector<8x1xf32>
    %412 = arith.divf %410, %411 : vector<8x1xf32>
    %413 = vector.broadcast %412 : vector<8x1xf32> to vector<8x128xf32>
    %414 = arith.subf %408, %413 : vector<8x128xf32>
    %415 = arith.mulf %414, %414 : vector<8x128xf32>
    %cst_120 = arith.constant dense<0.000000e+00> : vector<8xf32>
    %416 = vector.multi_reduction <add>, %415, %cst_120 [1] : vector<8x128xf32> to vector<8xf32>
    %417 = vector.shape_cast %416 : vector<8xf32> to vector<8x1xf32>
    %cst_121 = arith.constant 1.280000e+02 : f32
    %418 = vector.broadcast %cst_121 : f32 to vector<8x1xf32>
    %419 = arith.divf %417, %418 : vector<8x1xf32>
    %420 = vector.broadcast %412 : vector<8x1xf32> to vector<8x128xf32>
    %421 = arith.subf %408, %420 : vector<8x128xf32>
    %cst_122 = arith.constant 9.99999974E-6 : f32
    %422 = vector.broadcast %cst_122 : f32 to vector<8x1xf32>
    %423 = arith.addf %419, %422 : vector<8x1xf32>
    %424 = math.rsqrt %423 : vector<8x1xf32>
    %425 = vector.broadcast %424 : vector<8x1xf32> to vector<8x128xf32>
    %426 = arith.mulf %421, %425 : vector<8x128xf32>
    %427 = vector.broadcast %243 : vector<1x128xf32> to vector<8x128xf32>
    %428 = arith.mulf %426, %427 : vector<8x128xf32>
    %429 = vector.broadcast %244 : vector<1x128xf32> to vector<8x128xf32>
    %430 = arith.addf %428, %429 : vector<8x128xf32>
    %431 = arith.addf %393, %430 : vector<8x128xf32>
    %cst_123 = arith.constant dense<0.000000e+00> : vector<8xf32>
    %432 = vector.multi_reduction <add>, %431, %cst_123 [1] : vector<8x128xf32> to vector<8xf32>
    %433 = vector.shape_cast %432 : vector<8xf32> to vector<8x1xf32>
    %cst_124 = arith.constant 1.280000e+02 : f32
    %434 = vector.broadcast %cst_124 : f32 to vector<8x1xf32>
    %435 = arith.divf %433, %434 : vector<8x1xf32>
    %436 = vector.broadcast %435 : vector<8x1xf32> to vector<8x128xf32>
    %437 = arith.subf %431, %436 : vector<8x128xf32>
    %438 = arith.mulf %437, %437 : vector<8x128xf32>
    %cst_125 = arith.constant dense<0.000000e+00> : vector<8xf32>
    %439 = vector.multi_reduction <add>, %438, %cst_125 [1] : vector<8x128xf32> to vector<8xf32>
    %440 = vector.shape_cast %439 : vector<8xf32> to vector<8x1xf32>
    %cst_126 = arith.constant 1.280000e+02 : f32
    %441 = vector.broadcast %cst_126 : f32 to vector<8x1xf32>
    %442 = arith.divf %440, %441 : vector<8x1xf32>
    %443 = vector.broadcast %435 : vector<8x1xf32> to vector<8x128xf32>
    %444 = arith.subf %431, %443 : vector<8x128xf32>
    %cst_127 = arith.constant 9.99999974E-6 : f32
    %445 = vector.broadcast %cst_127 : f32 to vector<8x1xf32>
    %446 = arith.addf %442, %445 : vector<8x1xf32>
    %447 = math.rsqrt %446 : vector<8x1xf32>
    %448 = vector.broadcast %447 : vector<8x1xf32> to vector<8x128xf32>
    %449 = arith.mulf %444, %448 : vector<8x128xf32>
    %450 = vector.broadcast %245 : vector<1x128xf32> to vector<8x128xf32>
    %451 = arith.mulf %449, %450 : vector<8x128xf32>
    %452 = vector.broadcast %246 : vector<1x128xf32> to vector<8x128xf32>
    %453 = arith.addf %451, %452 : vector<8x128xf32>
    %c0_128 = arith.constant 0 : index
    %c0_129 = arith.constant 0 : index
    %c0_130 = arith.constant 0 : index
    %454 = vector.load %arg8[%c0_128, %c0_129, %c0_130] : memref<1x8x128xf32, #tpu.memory_space<vmem>>, vector<1x8x128xf32>
    %455 = vector.shape_cast %454 : vector<1x8x128xf32> to vector<8x128xf32>
    %456 = vector.shape_cast %453 : vector<8x128xf32> to vector<1x8x128xf32>
    tpu.vector_store %arg8[%c0_128, %c0_129, %c0_130], %456 {strides = array<i32>} : memref<1x8x128xf32, #tpu.memory_space<vmem>>, vector<1x8x128xf32>,
    return
  }
  func.func @transform_0(%arg0: i32) -> (i32, i32, i32) {
    %c0_i32 = arith.constant 0 : i32
    %c0_i32_0 = arith.constant 0 : i32
    %c0_i32_1 = arith.constant 0 : i32
    return %arg0, %c0_i32, %c0_i32_0 : i32, i32, i32
  }
  func.func @transform_1(%arg0: i32) -> (i32, i32, i32) {
    %c0_i32 = arith.constant 0 : i32
    %c0_i32_0 = arith.constant 0 : i32
    %c0_i32_1 = arith.constant 0 : i32
    %c0_i32_2 = arith.constant 0 : i32
    return %c0_i32, %c0_i32_0, %c0_i32_1 : i32, i32, i32
  }
  func.func @transform_2(%arg0: i32) -> (i32, i32, i32) {
    %c0_i32 = arith.constant 0 : i32
    %c0_i32_0 = arith.constant 0 : i32
    %c0_i32_1 = arith.constant 0 : i32
    %c0_i32_2 = arith.constant 0 : i32
    return %c0_i32, %c0_i32_0, %c0_i32_1 : i32, i32, i32
  }
  func.func @transform_3(%arg0: i32) -> (i32, i32, i32) {
    %c0_i32 = arith.constant 0 : i32
    %c0_i32_0 = arith.constant 0 : i32
    %c0_i32_1 = arith.constant 0 : i32
    %c0_i32_2 = arith.constant 0 : i32
    return %c0_i32, %c0_i32_0, %c0_i32_1 : i32, i32, i32
  }
  func.func @transform_4(%arg0: i32) -> (i32, i32, i32) {
    %c0_i32 = arith.constant 0 : i32
    %c0_i32_0 = arith.constant 0 : i32
    %c0_i32_1 = arith.constant 0 : i32
    %c0_i32_2 = arith.constant 0 : i32
    return %c0_i32, %c0_i32_0, %c0_i32_1 : i32, i32, i32
  }
  func.func @transform_5(%arg0: i32) -> (i32, i32, i32) {
    %c0_i32 = arith.constant 0 : i32
    %c0_i32_0 = arith.constant 0 : i32
    %c0_i32_1 = arith.constant 0 : i32
    %c0_i32_2 = arith.constant 0 : i32
    return %c0_i32, %c0_i32_0, %c0_i32_1 : i32, i32, i32
  }
  func.func @transform_6(%arg0: i32) -> (i32, i32, i32) {
    %c0_i32 = arith.constant 0 : i32
    %c0_i32_0 = arith.constant 0 : i32
    %c0_i32_1 = arith.constant 0 : i32
    %c0_i32_2 = arith.constant 0 : i32
    return %c0_i32, %c0_i32_0, %c0_i32_1 : i32, i32, i32
  }
  func.func @transform_7(%arg0: i32) -> (i32, i32, i32) {
    %c0_i32 = arith.constant 0 : i32
    %c0_i32_0 = arith.constant 0 : i32
    %c0_i32_1 = arith.constant 0 : i32
    return %arg0, %c0_i32, %c0_i32_0 : i32, i32, i32
  }
}

</mosaic_0001>

<bundles_post_ra>
// kernel: decoder_forward.1
= control target key start
LH: loop header
LB: loop body
LE: loop exit
PB: predicated region body
PF: predicated region fallthrough
CT: control target
= control target key end

     0   :  { %12 = vsyncpa [#allocation3], 0  ;;  %s4407_s0 = inlined_call_operand.vmem [shape: f32[2,8,128], index: 0, kind: input, shape index: {}]   ;;  %s4408_s1 = inlined_call_operand.hbm [shape: bf16[2,128,384], index: 1, kind: input, shape index: {}]   ;;  %s4409_s2 = inlined_call_operand.vmem [shape: bf16[2,128,128], index: 2, kind: input, shape index: {}]   ;;  %s4410_s3 = inlined_call_operand.hbm [shape: bf16[2,128,256], index: 3, kind: input, shape index: {}]   ;;  %s4411_s4 = inlined_call_operand.hbm [shape: bf16[2,256,128], index: 4, kind: input, shape index: {}]   ;;  %s4412_s5 = inlined_call_operand.vmem [shape: f32[2,8,384], index: 5, kind: input, shape index: {}]   ;;  %s4413_s6 = inlined_call_operand.vmem [shape: f32[2,16,128], index: 6, kind: input, shape index: {}]   ;;  %s4414_s7 = inlined_call_operand.hbm [shape: f32[2,8,128], index: 7, kind: output, shape index: {}]  }
   0x1   :  { %13 = vsyncpa [#allocation6], 0 }
   0x2   :  { %14 = vsyncpa [#allocation4], 0 }
   0x3   :  { %16 = vsyncpa [#allocation4 + $0x1], 0  ;;  %s3890_s24 = smov 0   ;;  %s3892_s25 = smov 0  }
   0x4   :  { %s3894_s26 = smov 0   ;;  %s3896_s27 = smov 0  }
   0x5 LB: > { %s3911_s28 = sadd.s32 4294967295, %s3831_s27   ;;  %s2925_s29 = sadd.s32 4294967294, %s3831_s27   ;;  %s3831_s27 = sphi %s3896_s27, %s4428_s27   ;;  %s3827_s26 = sphi %s3894_s26, %s4427_s26   ;;  %s3823_s25 = sphi %s3892_s25, %s4426_s25   ;;  %s3819_s24 = sphi %s3890_s24, %s4425_s24  }
   0x6   : > { %s3915_s30 = sadd.s32 1, %s3831_s27   ;;  %s181_s8 = sadd.s32 1, %s3827_s26 }
   0x7   : > { %s178_s9 = ssub.s32 %s3831_s27, %s3915_s30  ;;  %p191_p0 = scmp.ne.s32.totalorder %s3827_s26, %s3823_s25 }
   0x8   : > { %p179_p1 = scmp.eq.s32.totalorder %s178_s9, 0  ;;  %p192_p2 = scmp.eq.s32.totalorder %s3911_s28, 1 }
   0x9   : > { %p197_p3 = scmp.ne.s32.totalorder %s3823_s25, %s3819_s24  ;;  %p198_p4 = scmp.eq.s32.totalorder %s2925_s29, 1 }
   0xa   : > { %s3926_s10 = scalar_select %p179_p1, %s3827_s26, %s181_s8  }
   0xb   : > { %p3928_p5 = por %p192_p2, %p191_p0  ;;  %p3932_p6 = por %p198_p4, %p197_p3 }
   0xc   : > { %p2926_p7 = scmp.ge.s32.totalorder %s3831_s27, 1  ;;  %p205_p8 = scmp.lt.s32.totalorder %s3831_s27, 3 }
   0xd   : > { %s4417_s12 = scalar_select %p3932_p6, 1, 0 }
   0xe   : > { %p4415_p9 = scmp.eq.s32.totalorder %s3911_s28, 0  ;;  %p3939_p10 = pnand %p2926_p7, %p205_p8 }
   0xf   : > { %s3833_s14 = smov [#allocation5]   ;;  %s3834_s17 = smov [#allocation2]  }
  0x10   : > { %s233_s15 = sshll.u32 %s3833_s14, 4  ;;  %p3408_p11 = pneg %p3939_p10  ;;  %s234_s15 = int_to_ptr.vmem [resolvable:$true] %s233_s15 }
  0x11   : > { %s217_s18 = sshll.u32 %s3834_s17, 4  ;;  %s3696_s19 = scalar_lea.vmem %s234_s15, 4096  ;;  %s218_s18 = int_to_ptr.vmem [resolvable:$true] %s217_s18 }
  0x12   : > { %p3947_p12 = pnand %p4415_p9, %p3408_p11  ;;  %p3697_p0 = scmp.ne.s32.totalorder %s234_s15, %s3696_s19 }
  0x13   : > { %p3704_p3 = scmp.lt.s32.totalorder %s234_s15, %s234_s15  ;;  %p3705_p4 = scmp.lt.s32.totalorder %s3696_s19, %s3696_s19 }
  0x14   : > { %p3687_p13 = pneg %p3947_p12 }
  0x15   : > { %p3706_p7 = por %p3705_p4, %p3704_p3 }
  0x16   : > { %p3699_p1 = pnand %p3697_p0, %p3687_p13 }
  0x18   : > { %p3700_p2 = pneg %p3699_p1 }
  0x1a   : > { %p3707_p8 = pnand %p3706_p7, %p3700_p2 }
  0x1c   : > { %3710 = shalt.err (!%p3707_p8)
}
  0x1d   : > { %s3835_s20 = smov 128   ;;  %s3836_s21 = smov 8  }
  0x1e   : > { %3414 = dma.hbm_to_vmem [thread:$0]  (!%p3947_p12), %s4410_s3, 4096, %s234_s15, [#allocation6], %s3835_s20, %s3835_s20, %s3836_s21  }
  0x1f   : > { %s3722_s29 = scalar_lea.vmem %s218_s18, 6144  ;;  %p3730_p9 = scmp.lt.s32.totalorder %s218_s18, %s218_s18 }
  0x20   : > { %p3723_p11 = scmp.ne.s32.totalorder %s218_s18, %s3722_s29  ;;  %p3731_p6 = scmp.lt.s32.totalorder %s3722_s29, %s3722_s29 }
  0x22   : > { %p3725_p0 = pnand %p3723_p11, %p3687_p13  ;;  %p3732_p3 = por %p3731_p6, %p3730_p9 }
  0x24   : > { %p3726_p1 = pneg %p3725_p0 }
  0x26   : > { %p3733_p2 = pnand %p3732_p3, %p3726_p1 }
  0x28   : > { %3736 = shalt.err (!%p3733_p2)
}
  0x29   : > { %s3837_s8 = smov 192   ;;  %s3838_s9 = smov 12  }
  0x2a   : > { %3411 = dma.hbm_to_vmem [thread:$0]  (!%p3947_p12), %s4408_s1, 6144, %s218_s18, [#allocation3], %s3837_s8, %s3837_s8, %s3838_s9  }
  0x2b   : > { %s3839_s15 = smov [#allocation7]  }
  0x2c   : > { %s246_s19 = sshll.u32 %s3839_s15, 4  ;;  %s247_s19 = int_to_ptr.vmem [resolvable:$true] %s246_s19 }
  0x2d   : > { %s3748_s20 = scalar_lea.vmem %s247_s19, 4096  ;;  %p3756_p9 = scmp.lt.s32.totalorder %s247_s19, %s247_s19 }
  0x2e   : > { %p3749_p4 = scmp.ne.s32.totalorder %s247_s19, %s3748_s20  ;;  %p3757_p8 = scmp.lt.s32.totalorder %s3748_s20, %s3748_s20 }
  0x30   : > { %p3751_p7 = pnand %p3749_p4, %p3687_p13  ;;  %p3758_p11 = por %p3757_p8, %p3756_p9 }
  0x32   : > { %p3752_p6 = pneg %p3751_p7 }
  0x34   : > { %p3759_p0 = pnand %p3758_p11, %p3752_p6 }
  0x36   : > { %3762 = shalt.err (!%p3759_p0)
}
  0x37   : > { %s3840_s21 = smov 64   ;;  %s3841_s22 = smov 4  }
  0x38   : > { %3417 = dma.hbm_to_vmem [thread:$0]  (!%p3947_p12), %s4411_s4, 4096, %s247_s19, [#allocation6], %s3840_s21, %s3840_s21, %s3841_s22  }
  0x39   : > { %275 = sbr.rel (%p3939_p10) target bundleno = 6913 (0x1b01), region = 48  ;;  %p4420_p1 = scmp.eq.s32.totalorder (!%p3939_p10), %s3911_s28, 0 }
  0x3e   : > { %3806 = dma.done.wait (%p4420_p1), [#allocation3], 6144   ;;  %p4421_p13 = pmov %p4420_p1 }
  0x3f   : > { %p4422_p3 = pmov %p4420_p1 }
  0x40   : > { %3808 = vsyncadd (%p4421_p13), [#allocation3], 4294961152 }
  0x41   : > { %3810 = dma.done.wait (%p4422_p3), [#allocation6], 8192   ;;  %p4423_p2 = pmov %p4420_p1 }
  0x42   : > { %v3842_v0 = vmov 0   ;;  %v3843_v1 = vmov 0.0   ;;  %v3477_v2 = vld [vmem:[#allocation2 + $0xac] ss:$12 sps:$4 sm:$0xff]   ;;  %v3479_v3 = vld [vmem:[#allocation2 + $0xa8] ss:$12 sps:$4 sm:$0xff]   ;;  %v320_v28 = vlaneseq }
  0x43   : > { %3812 = vsyncadd (%p4423_p2), [#allocation6], 4294959104  ;;  %536 = vmatprep.mubr.bf16.mxu0 %v3842_v0  ;;  %3218 = vmatprep.subr.bf16.mxu1 %v3843_v1  ;;  %v3480_v4 = vld [vmem:[#allocation2 + $0x94] ss:$12 sps:$4 sm:$0xff]   ;;  %v3482_v5 = vld [vmem:[#allocation2 + $0x90] ss:$12 sps:$4 sm:$0xff]  }
  0x44   : > { %504 = vmatprep.subr.bf16.mxu0 %v3477_v2  ;;  %v3483_v6 = vld [vmem:[#allocation2 + $0x7c] ss:$12 sps:$4 sm:$0xff]   ;;  %p314_p10 = scmp.lt.s32.totalorder %s3911_s28, 1  ;;  %v3485_v7 = vld [vmem:[#allocation2 + $0x78] ss:$12 sps:$4 sm:$0xff]   ;;  %vm3844_vm0 = vmmov 0  }
  0x45   : > { %505 = vmatpush1.bf16.msra.mxu0 %v3479_v3  ;;  %v3486_v8 = vld [vmem:[#allocation2 + $0x64] ss:$12 sps:$4 sm:$0xff]   ;;  %v3488_v9 = vld [vmem:[#allocation2 + $0x60] ss:$12 sps:$4 sm:$0xff]   ;;  %v3491_v13 = vld [vmem:[#allocation2 + $0x48] ss:$12 sps:$4 sm:$0xff]   ;;  %3234 = vmatprep.mubr.msk.bf16.mxu1 %vm3844_vm0, %v3843_v1 }
  0x46   : > { %506 = vmatprep.subr.bf16.mxu0 %v3480_v4  ;;  %s315_s13 = scalar_select %p314_p10, %s3911_s28, 1  ;;  %v3501_v10 = vld [vmem:[#allocation2 + $0xb0] ss:$12 sps:$4 sm:$0xff]   ;;  %v3489_v11 = vld [vmem:[#allocation2 + $0x4c] ss:$12 sps:$4 sm:$0xff]   ;;  %v4013_v29 = vshrl.u32 %v320_v28, 7 }
  0x47   : > { %3219 = vmatpush3.bf16.msra.mxu1 %v3501_v10  ;;  %v3502_v12 = vld [vmem:[#allocation2 + $0x98] ss:$12 sps:$4 sm:$0xff]   ;;  %v3492_v14 = vld [vmem:[#allocation2 + $0x34] ss:$12 sps:$4 sm:$0xff]   ;;  %v3494_v15 = vld [vmem:[#allocation2 + $0x30] ss:$12 sps:$4 sm:$0xff]  }
  0x48   : > { %s2936_s16 = sshll.u32 %s315_s13, 3  ;;  %3220 = vmatprep.subr.bf16.mxu1 %v3843_v1  ;;  %v3503_v16 = vld [vmem:[#allocation2 + $0x80] ss:$12 sps:$4 sm:$0xff]   ;;  %v3495_v17 = vld [vmem:[#allocation2 + $0x1c] ss:$12 sps:$4 sm:$0xff]   ;;  %v4021_v31 = vsub.s32 0, %v4013_v29 }
  0x49   : > { %507 = vmatpush1.bf16.msra.mxu0 %v3482_v5  ;;  %v3504_v18 = vld [vmem:[#allocation2 + $0x68] ss:$12 sps:$4 sm:$0xff]   ;;  %v3497_v19 = vld [vmem:[#allocation2 + $0x18] ss:$12 sps:$4 sm:$0xff]   ;;  %s317_s9 = scalar_lea.vmem %s4407_s0, %s2936_s16  ;;  %v3505_v21 = vld [vmem:[#allocation2 + $0x50] ss:$12 sps:$4 sm:$0xff]  }
  0x4a   : > { %508 = vmatprep.subr.bf16.mxu0 %v3483_v6  ;;  %v3498_v20 = vld [vmem:[#allocation2 + $0x4] ss:$12 sps:$4 sm:$0xff]   ;;  %v3500_v22 = vld [vmem:[#allocation2] ss:$12 sps:$4 sm:$0xff]   ;;  %v3508_v27 = vld [vmem:[#allocation2 + $0x8] ss:$12 sps:$4 sm:$0xff]  }
  0x4b   : > { %3221 = vmatpush3.bf16.msra.mxu1 %v3502_v12  ;;  %v3997_v23 = vld [vmem:[%s317_s9] sm:$0xff]  ;;  %v4018_v30 = vld [vmem:[%s4412_s5 + $0x8] sm:$0xff]  ;;  %vm588_vm1 = vcmask 261120   ;;  %s3845_s20 = smov 96   ;;  %s3846_s21 = smov 64   ;;  %v328_v44 = vld [vmem:[%s4412_s5 + $0x10] sm:$0xff] }
  0x4c   : > { %3222 = vmatprep.subr.bf16.mxu1 %v3843_v1  ;;  %v3506_v24 = vld [vmem:[#allocation2 + $0x38] ss:$12 sps:$4 sm:$0xff]   ;;  %v331_v25 = vpack.c.bf16 %v3997_v23, %v3997_v23  ;;  %v3507_v26 = vld [vmem:[#allocation2 + $0x20] ss:$12 sps:$4 sm:$0xff]   ;;  %v371_v33 = vrot.slane %v4018_v30, %v4021_v31  ;;  %s3847_s22 = smov 32   ;;  %v375_v45 = vrot.slane %v328_v44, %v4021_v31  ;;  %vm653_vm2 = vcmask 1043456  }
  0x4d   : > { %509 = vmatpush1.bf16.msra.mxu0 %v3485_v7  ;;  %v4026_v32 = vld [vmem:[%s4412_s5] sm:$0xff]  ;;  %v323_v53 = vand.u32 127, %v320_v28  ;;  %v3848_v55 = vmov -1e+09   ;;  %vm637_vm4 = vcmask 64512   ;;  %vm1049_vm5 = vcmask 523264  }
  0x4e   : > { %510 = vmatprep.subr.bf16.mxu0 %v3486_v8  ;;  %v367_v35 = vrot.slane %v4026_v32, %v4021_v31  ;;  %vm1051_vm6 = vcmask 785408   ;;  %s3103_s16 = sshll.u32 %s3911_s28, 7 }
  0x4f   : > { %3223 = vmatpush3.bf16.msra.mxu1 %v3503_v16  ;;  %vm324_vm3 = vcmp.le.s32.totalorder %v323_v53, %v4013_v29  ;;  %s2833_s17 = scalar_lea.hbm %s4414_s7, %s3103_s16 }
  0x50   : > { %3224 = vmatprep.subr.bf16.mxu1 %v3843_v1  ;;  %v4052_v56 = vsel %vm324_vm3, 0.0, %v3848_v55 }
  0x51   : > { %511 = vmatpush1.bf16.msra.mxu0 %v3488_v9 }
  0x52   : > { %512 = vmatprep.subr.bf16.mxu0 %v3489_v11 }
  0x53   : > { %3225 = vmatpush3.bf16.msra.mxu1 %v3504_v18 }
  0x54   : > { %3226 = vmatprep.subr.bf16.mxu1 %v3843_v1 }
  0x55   : > { %513 = vmatpush1.bf16.msra.mxu0 %v3491_v13 }
  0x56   : > { %514 = vmatprep.subr.bf16.mxu0 %v3492_v14 }
  0x57   : > { %3227 = vmatpush3.bf16.msra.mxu1 %v3505_v21 }
  0x58   : > { %3228 = vmatprep.subr.bf16.mxu1 %v3843_v1 }
  0x59   : > { %515 = vmatpush1.bf16.msra.mxu0 %v3494_v15 }
  0x5a   : > { %516 = vmatprep.subr.bf16.mxu0 %v3495_v17 }
  0x5b   : > { %3229 = vmatpush3.bf16.msra.mxu1 %v3506_v24 }
  0x5c   : > { %3230 = vmatprep.subr.bf16.mxu1 %v3843_v1 }
  0x5d   : > { %517 = vmatpush1.bf16.msra.mxu0 %v3497_v19 }
  0x5e   : > { %518 = vmatprep.subr.bf16.mxu0 %v3498_v20 }
  0x5f   : > { %3231 = vmatpush3.bf16.msra.mxu1 %v3507_v26 }
  0x60   : > { %3232 = vmatprep.subr.bf16.mxu1 %v3843_v1 }
  0x61   : > { %519 = vmatpush1.bf16.msra.mxu0 %v3500_v22 }
  0x62   : > { %3262 = vmatprep.subr.bf16.mxu0 %v3843_v1 }
  0x63   : > { %3233 = vmatpush3.bf16.msra.mxu1 %v3508_v27 }
  0x64   : > { %537 = vmatmul.mubr.bf16.vlgmr.msra.gmra.mxu0 %v331_v25  ;;  %3238 = vmatprep.subr.bf16.mxu1 %v3843_v1 }
  0x65   : > { %3264 = vmatprep.mubr.msk.bf16.mxu0 %vm3844_vm0, %v3843_v1 }
  0x66   : > { %3235 = vmatmul.mubr.bf16.vlgmr.msra.gmra.mxu1 %v331_v25 }
  0x67   : > { %3240 = vmatprep.mubr.msk.bf16.mxu1 %vm3844_vm0, %v3843_v1 }
 0x124   : > { %v538_v34 = vpop.f32.mrf.mxu0 }
 0x125   : > { %v539_v39 = vadd.f32 %v538_v34, %v367_v35 }
 0x126   : > { %v540_v36 = vpop.f32.mrf.mxu0  ;;  %v579_v46 = vpop.f32.mrf.mxu1 }
 0x127   : > { %v541_v37 = vadd.f32 %v540_v36, %v371_v33  ;;  %v585_v43 = vpack.c.bf16 %v539_v39, %v539_v39  ;;  %v580_v47 = vadd.f32 %v579_v46, %v375_v45 }
 0x128   : > { %v542_v38 = vpop.f32.mrf.mxu0  ;;  %v3236_v48 = vpop.f32.mrf.mxu1 }
 0x129   : > { %v586_v40 = vpack.c.bf16 %v541_v37, %v541_v37  ;;  %v4046_v49 = vpack.c.bf16 %v580_v47, %v580_v47 }
 0x12a   : > { %v543_v41 = vpop.f32.mrf.mxu0  ;;  %v582_v50 = vpop.f32.mrf.mxu1 }
 0x12b   : > { %701 = vrot.lane.b32.xlu1 %v586_v40, %s3845_s20  ;;  %v593_v42 = vsel %vm588_vm1, %v586_v40, 0  ;;  %v655_v51 = vsel %vm653_vm2, %v4046_v49, 0 }
 0x12c   : > { %3239 = vmatpush3.bf16.xpose.msra.mxu1 %v593_v42  ;;  %v3237_v52 = vpop.f32.mrf.mxu1 }
 0x12d   : > { %3244 = vmatprep.subr.bf16.mxu1 %v3843_v1 }
 0x12f   : > { %698 = vrot.lane.b32.xlu1 %v585_v43, %s3845_s20 }
 0x133   : > { %812 = vrot.lane.b32.xlu1 %v585_v43, %s3846_s21  ;;  %3241 = vmatmul.mubr.msk.bf16.vlgmr.msra.gmra.mxu1 %vm588_vm1, %v585_v43 }
 0x134   : > { %3246 = vmatprep.mubr.msk.bf16.mxu1 %vm3844_vm0, %v3843_v1  ;;  %3245 = vmatpush3.bf16.msra.mxu1 %v655_v51 }
 0x135   : > { %3250 = vmatprep.subr.bf16.mxu1 %v3843_v1 }
 0x137   : > { %926 = vrot.lane.b32.xlu1 %v586_v40, %s3847_s22 }
 0x13b   : > { %924 = vrot.lane.b32.xlu1 %v585_v43, %s3847_s22 }
 0x19d   : > { %v702_v6 = vpop.permute.xlu1 %701 }
 0x19e   : > { %v707_v17 = vsel %vm588_vm1, %v702_v6, 0 }
 0x1a1   : > { %v699_v7 = vpop.permute.xlu1 %698 }
 0x1a5   : > { %v813_v9 = vpop.permute.xlu1 %812 }
 0x1a9   : > { %v927_v12 = vpop.permute.xlu1 %926 }
 0x1aa   : > { %v932_v13 = vsel %vm588_vm1, %v927_v12, 0 }
 0x1ad   : > { %v925_v18 = vpop.permute.xlu1 %924 }
 0x1f3   : > { %v629_v54 = vpop.f32.mrf.mxu1 }
 0x1f4   : > { %v635_v57 = vmul.f32 0.17677669, %v629_v54 }
 0x1f5   : > { %v3242_v58 = vpop.f32.mrf.mxu1 }
 0x1f6   : > { %v636_v59 = vadd.f32 %v635_v57, %v4052_v56 }
 0x1f7   : > { %v632_v60 = vpop.f32.mrf.mxu1 }
 0x1f8   : > { %v638_v61 = vsel %vm637_vm4, %v636_v59, -inf }
 0x1f9   : > { %639 = vmax.xlane.f32.xlu0 %v638_v61  ;;  %v3243_v62 = vpop.f32.mrf.mxu1 }
 0x282   : > { %v640_v63 = vpop.xlane.xlu0 %639 }
 0x283   : > { %v641_v2 = vsub.f32 %v636_v59, %v640_v63 }
 0x285   : > { %v642_v3 = vmul.f32 1.442695, %v641_v2 }
 0x287   : > { %3637 = vpow2.f32 %v642_v3 }
 0x294   : > { %v3638_v4 = vpop.eup %3637 }
 0x295   : > { %v644_v5 = vsel %vm637_vm4, %v3638_v4, 0.0 }
 0x296   : > { %645 = vadd.xlane.f32.xlu0 %v644_v5 }
 0x2ac   : > { %814 = vrot.lane.b32.xlu0 %v586_v40, %s3846_s21 }
 0x31f   : > { %v646_v8 = vpop.xlane.xlu0 %645 }
 0x320   : > { %3639 = vrcp.f32 %v646_v8 }
 0x323   : > { %v815_v10 = vpop.permute.xlu0 %814 }
 0x324   : > { %v820_v11 = vsel %vm588_vm1, %v815_v10, 0 }
 0x325   : > { %3263 = vmatpush3.bf16.xpose.msra.mxu0 %v820_v11 }
 0x326   : > { %3274 = vmatprep.subr.bf16.mxu0 %v3843_v1 }
 0x32c   : > { %3265 = vmatmul.mubr.msk.bf16.vlgmr.msra.gmra.mxu0 %vm588_vm1, %v813_v9 }
 0x32d   : > { %v3640_v14 = vpop.eup %3639  ;;  %3275 = vmatpush3.bf16.xpose.msra.mxu0 %v932_v13  ;;  %3276 = vmatprep.mubr.msk.bf16.mxu0 %vm3844_vm0, %v3843_v1 }
 0x32e   : > { %v648_v15 = vmul.f32 %v3640_v14, %v3638_v4  ;;  %3286 = vmatprep.subr.bf16.mxu0 %v3843_v1 }
 0x330   : > { %v649_v16 = vpack.c.bf16 %v648_v15, %v648_v15 }
 0x332   : > { %3247 = vmatmul.mubr.msk.bf16.vlgmr.msra.gmra.mxu1 %vm637_vm4, %v649_v16 }
 0x333   : > { %3251 = vmatpush3.bf16.xpose.msra.mxu1 %v707_v17  ;;  %3252 = vmatprep.mubr.msk.bf16.mxu1 %vm3844_vm0, %v3843_v1 }
 0x334   : > { %3277 = vmatmul.mubr.msk.bf16.vlgmr.msra.gmra.mxu0 %vm588_vm1, %v925_v18  ;;  %3256 = vmatprep.subr.bf16.mxu1 %v3843_v1 }
 0x335   : > { %3302 = vmatprep.mubr.msk.bf16.mxu0 %vm3844_vm0, %v3843_v1 }
 0x33a   : > { %3253 = vmatmul.mubr.msk.bf16.vlgmr.msra.gmra.mxu1 %vm588_vm1, %v699_v7 }
 0x33b   : > { %3258 = vmatprep.mubr.msk.bf16.mxu1 %vm3844_vm0, %v3843_v1 }
 0x3ec   : > { %v856_v19 = vpop.f32.mrf.mxu0 }
 0x3ed   : > { %v862_v20 = vmul.f32 0.17677669, %v856_v19 }
 0x3ee   : > { %v3266_v21 = vpop.f32.mrf.mxu0 }
 0x3ef   : > { %v863_v22 = vadd.f32 %v862_v20, %v4052_v56  ;;  %v3509_v21 = vld [vmem:[%s4409_s2 + $0x38] sm:$0xff]  }
 0x3f0   : > { %v859_v24 = vpop.f32.mrf.mxu0  ;;  %3287 = vmatpush3.bf16.msra.mxu0 %v3509_v21 }
 0x3f1   : > { %v864_v25 = vsel %vm637_vm4, %v863_v22, -inf  ;;  %3288 = vmatprep.subr.bf16.mxu0 %v3843_v1  ;;  %v3511_v24 = vld [vmem:[%s4409_s2 + $0x28] sm:$0xff]  }
 0x3f2   : > { %865 = vmax.xlane.f32.xlu0 %v864_v25  ;;  %v4078_v26 = vpop.f32.mrf.mxu1  ;;  %v3267_v27 = vpop.f32.mrf.mxu0  ;;  %v3512_v25 = vld [vmem:[%s4409_s2 + $0x20] sm:$0xff]  }
 0x3f3   : > { %v3513_v27 = vld [vmem:[%s4409_s2 + $0x18] sm:$0xff]  }
 0x3f4   : > { %v3248_v28 = vpop.f32.mrf.mxu1  ;;  %v968_v33 = vpop.f32.mrf.mxu0 }
 0x3f5   : > { %v974_v40 = vmul.f32 0.17677669, %v968_v33  ;;  %v3514_v28 = vld [vmem:[%s4409_s2 + $0x10] sm:$0xff]   ;;  %v3515_v33 = vld [vmem:[%s4409_s2 + $0x8] sm:$0xff]  }
 0x3f6   : > { %v694_v34 = vpop.f32.mrf.mxu1  ;;  %v3278_v35 = vpop.f32.mrf.mxu0 }
 0x3f7   : > { %v975_v46 = vadd.f32 %v974_v40, %v4052_v56 }
 0x3f8   : > { %v3249_v36 = vpop.f32.mrf.mxu1  ;;  %v971_v37 = vpop.f32.mrf.mxu0 }
 0x3f9   : > { %v976_v48 = vsel %vm637_vm4, %v975_v46, -inf  ;;  %v3516_v36 = vld [vmem:[%s4409_s2] sm:$0xff]  }
 0x3fa   : > { %v743_v38 = vpop.f32.mrf.mxu1  ;;  %v3279_v39 = vpop.f32.mrf.mxu0 }
 0x3fb   : > { %v749_v41 = vmul.f32 0.17677669, %v743_v38 }
 0x3fc   : > { %v3254_v42 = vpop.f32.mrf.mxu1 }
 0x3fd   : > { %v750_v43 = vadd.f32 %v749_v41, %v4052_v56 }
 0x3fe   : > { %v746_v44 = vpop.f32.mrf.mxu1 }
 0x3ff   : > { %v751_v45 = vsel %vm637_vm4, %v750_v43, -inf }
 0x400   : > { %752 = vmax.xlane.f32.xlu1 %v751_v45  ;;  %v3255_v47 = vpop.f32.mrf.mxu1 }
 0x404   : > { %977 = vmax.xlane.f32.xlu1 %v976_v48 }
 0x47b   : > { %v866_v50 = vpop.xlane.xlu0 %865 }
 0x47c   : > { %v867_v51 = vsub.f32 %v863_v22, %v866_v50  ;;  %v3510_v22 = vld [vmem:[%s4409_s2 + $0x30] sm:$0xff]  }
 0x47d   : > { %3289 = vmatpush3.bf16.msra.mxu0 %v3510_v22 }
 0x47e   : > { %v868_v52 = vmul.f32 1.442695, %v867_v51  ;;  %3290 = vmatprep.subr.bf16.mxu0 %v3843_v1 }
 0x480   : > { %3641 = vpow2.f32 %v868_v52 }
 0x481   : > { %3291 = vmatpush3.bf16.msra.mxu0 %v3511_v24 }
 0x482   : > { %3292 = vmatprep.subr.bf16.mxu0 %v3843_v1 }
 0x485   : > { %3293 = vmatpush3.bf16.msra.mxu0 %v3512_v25  ;;  %v3525_v25 = vld [vmem:[#allocation5 + $0x54] ss:$8 sps:$4 sm:$0xff]  }
 0x486   : > { %3294 = vmatprep.subr.bf16.mxu0 %v3843_v1 }
 0x489   : > { %v753_v53 = vpop.xlane.xlu1 %752  ;;  %3295 = vmatpush3.bf16.msra.mxu0 %v3513_v27  ;;  %v3523_v27 = vld [vmem:[#allocation5 + $0x50] ss:$8 sps:$4 sm:$0xff]  }
 0x48a   : > { %v754_v54 = vsub.f32 %v750_v43, %v753_v53  ;;  %3296 = vmatprep.subr.bf16.mxu0 %v3843_v1 }
 0x48c   : > { %v755_v60 = vmul.f32 1.442695, %v754_v54 }
 0x48d   : > { %v3642_v55 = vpop.eup %3641  ;;  %v978_v57 = vpop.xlane.xlu1 %977  ;;  %3297 = vmatpush3.bf16.msra.mxu0 %v3514_v28  ;;  %v3528_v28 = vld [vmem:[#allocation5 + $0x44] ss:$8 sps:$4 sm:$0xff]  }
 0x48e   : > { %v979_v58 = vsub.f32 %v975_v46, %v978_v57  ;;  %v870_v59 = vsel %vm637_vm4, %v3642_v55, 0.0  ;;  %3298 = vmatprep.subr.bf16.mxu0 %v3843_v1 }
 0x48f   : > { %871 = vadd.xlane.f32.xlu0 %v870_v59 }
 0x490   : > { %v980_v61 = vmul.f32 1.442695, %v979_v58 }
 0x491   : > { %3299 = vmatpush3.bf16.msra.mxu0 %v3515_v33  ;;  %v3531_v33 = vld [vmem:[#allocation5 + $0x34] ss:$8 sps:$4 sm:$0xff]  }
 0x492   : > { %3643 = vpow2.f32 %v980_v61  ;;  %3300 = vmatprep.subr.bf16.mxu0 %v3843_v1 }
 0x493   : > { %3645 = vpow2.f32 %v755_v60 }
 0x495   : > { %3301 = vmatpush3.bf16.msra.mxu0 %v3516_v36  ;;  %v3532_v36 = vld [vmem:[#allocation5 + $0x20] ss:$8 sps:$4 sm:$0xff]  }
 0x49f   : > { %v3644_v62 = vpop.eup %3643 }
 0x4a0   : > { %v982_v63 = vsel %vm637_vm4, %v3644_v62, 0.0  ;;  %v3646_v2 = vpop.eup %3645 }
 0x4a1   : > { %983 = vadd.xlane.f32.xlu1 %v982_v63  ;;  %v757_v3 = vsel %vm637_vm4, %v3646_v2, 0.0 }
 0x4a5   : > { %764 = vrot.lane.b32.xlu0 %v4046_v49, %s3845_s20  ;;  %758 = vadd.xlane.f32.xlu1 %v757_v3 }
 0x4b6   : > { %876 = vrot.lane.b32.xlu1 %v4046_v49, %s3846_s21 }
 0x4ba   : > { %988 = vrot.lane.b32.xlu1 %v4046_v49, %s3847_s22 }
 0x518   : > { %v872_v4 = vpop.xlane.xlu0 %871 }
 0x51c   : > { %v765_v5 = vpop.permute.xlu0 %764 }
 0x51d   : > { %v770_v6 = vsel %vm653_vm2, %v765_v5, 0 }
 0x51e   : > { %3257 = vmatpush3.bf16.msra.mxu1 %v770_v6 }
 0x51f   : > { %3268 = vmatprep.subr.bf16.mxu1 %v3843_v1 }
 0x52a   : > { %v984_v7 = vpop.xlane.xlu1 %983 }
 0x52e   : > { %v759_v8 = vpop.xlane.xlu1 %758 }
 0x52f   : > { %3647 = vrcp.f32 %v759_v8  ;;  %v4153_v8 = vsub.s32 1, %v4013_v29 }
 0x530   : > { %3649 = vrcp.f32 %v872_v4 }
 0x531   : > { %3651 = vrcp.f32 %v984_v7 }
 0x532   : > { %v877_v11 = vpop.permute.xlu1 %876 }
 0x533   : > { %v882_v14 = vsel %vm653_vm2, %v877_v11, 0 }
 0x536   : > { %v989_v15 = vpop.permute.xlu1 %988 }
 0x537   : > { %v994_v18 = vsel %vm653_vm2, %v989_v15, 0 }
 0x53c   : > { %v3648_v9 = vpop.eup %3647 }
 0x53d   : > { %v761_v10 = vmul.f32 %v3648_v9, %v3646_v2  ;;  %v3650_v13 = vpop.eup %3649  ;;  %v1182_v9 = vsub.s32 2, %v4013_v29 }
 0x53e   : > { %v874_v49 = vmul.f32 %v3650_v13, %v3642_v55  ;;  %v3652_v17 = vpop.eup %3651  ;;  %v4147_v55 = vld [vmem:[%s4413_s6] sm:$0xff] }
 0x53f   : > { %v762_v12 = vpack.c.bf16 %v761_v10, %v761_v10  ;;  %v986_v19 = vmul.f32 %v3652_v17, %v3644_v62  ;;  %v1073_v57 = vrot.slane %v4147_v55, %v4021_v31  ;;  %v1178_v10 = vrot.slane %v4147_v55, %v4153_v8  ;;  %v3519_v17 = vld [vmem:[#allocation5 + $0x74] ss:$8 sps:$4 sm:$0xff]  }
 0x540   : > { %v875_v16 = vpack.c.bf16 %v874_v49, %v874_v49  ;;  %v1183_v13 = vrot.slane %v4147_v55, %v1182_v9 }
 0x541   : > { %3259 = vmatmul.mubr.msk.bf16.vlgmr.msra.gmra.mxu1 %vm637_vm4, %v762_v12  ;;  %v987_v20 = vpack.c.bf16 %v986_v19, %v986_v19  ;;  %v3520_v19 = vld [vmem:[#allocation5 + $0x60] ss:$8 sps:$4 sm:$0xff]  }
 0x542   : > { %3269 = vmatpush3.bf16.msra.mxu1 %v882_v14  ;;  %3270 = vmatprep.mubr.msk.bf16.mxu1 %vm3844_vm0, %v3843_v1 }
 0x543   : > { %3280 = vmatprep.subr.bf16.mxu1 %v3843_v1 }
 0x549   : > { %3271 = vmatmul.mubr.msk.bf16.vlgmr.msra.gmra.mxu1 %vm637_vm4, %v875_v16  ;;  %v3517_v16 = vld [vmem:[#allocation5 + $0x70] ss:$8 sps:$4 sm:$0xff]  }
 0x54a   : > { %3281 = vmatpush3.bf16.msra.mxu1 %v994_v18  ;;  %3282 = vmatprep.mubr.msk.bf16.mxu1 %vm3844_vm0, %v3843_v1  ;;  %v3522_v18 = vld [vmem:[#allocation5 + $0x64] ss:$8 sps:$4 sm:$0xff]  }
 0x54b   : > { %1312 = vmatprep.subr.bf16.mxu1 %v3519_v17 }
 0x551   : > { %3283 = vmatmul.mubr.msk.bf16.vlgmr.msra.gmra.mxu1 %vm637_vm4, %v987_v20 }
 0x552   : > { %1344 = vmatprep.mubr.bf16.mxu1 %v3842_v0  ;;  %1313 = vmatpush1.bf16.msra.mxu1 %v3517_v16 }
 0x553   : > { %1314 = vmatprep.subr.bf16.mxu1 %v3522_v18 }
 0x556   : > { %1315 = vmatpush1.bf16.msra.mxu1 %v3520_v19 }
 0x557   : > { %1316 = vmatprep.subr.bf16.mxu1 %v3525_v25 }
 0x55a   : > { %1317 = vmatpush1.bf16.msra.mxu1 %v3523_v27 }
 0x55b   : > { %1318 = vmatprep.subr.bf16.mxu1 %v3528_v28 }
 0x601   : > { %v806_v34 = vpop.f32.mrf.mxu1 }
 0x602   : > { %1037 = vrot.lane.b32.xlu0 %v806_v34, %s3847_s22  ;;  %v3529_v34 = vld [vmem:[#allocation5 + $0x30] ss:$8 sps:$4 sm:$0xff]  }
 0x603   : > { %v3260_v35 = vpop.f32.mrf.mxu1 }
 0x604   : > { %v3534_v35 = vld [vmem:[#allocation5 + $0x24] ss:$8 sps:$4 sm:$0xff]  }
 0x605   : > { %v809_v37 = vpop.f32.mrf.mxu1 }
 0x606   : > { %v3537_v37 = vld [vmem:[#allocation5 + $0x14] ss:$8 sps:$4 sm:$0xff]  }
 0x607   : > { %v3261_v38 = vpop.f32.mrf.mxu1 }
 0x608   : > { %v3535_v38 = vld [vmem:[#allocation5 + $0x10] ss:$8 sps:$4 sm:$0xff]  }
 0x609   : > { %v918_v39 = vpop.f32.mrf.mxu1 }
 0x60a   : > { %1041 = vrot.lane.b32.xlu1 %v918_v39, %s3846_s21  ;;  %v3540_v39 = vld [vmem:[#allocation5 + $0x4] ss:$8 sps:$4 sm:$0xff]  }
 0x60b   : > { %v3272_v40 = vpop.f32.mrf.mxu1 }
 0x60c   : > { %v3538_v40 = vld [vmem:[#allocation5] ss:$8 sps:$4 sm:$0xff]  }
 0x60d   : > { %v921_v41 = vpop.f32.mrf.mxu1 }
 0x60e   : > { %v3541_v41 = vld [vmem:[#allocation7 + $0x78] sm:$0xff]  }
 0x60f   : > { %v3273_v42 = vpop.f32.mrf.mxu1  ;;  %3140 = vmatprep.subr.bf16.mxu0 %v3541_v41  ;;  %v1543_v41 = vsub.s32 6, %v4013_v29 }
 0x610   : > { %v3542_v42 = vld [vmem:[#allocation7 + $0x38] sm:$0xff]  }
 0x611   : > { %v1030_v43 = vpop.f32.mrf.mxu1 }
 0x612   : > { %1045 = vrot.lane.b32.xlu0 %v1030_v43, %s3845_s20  ;;  %v3543_v43 = vld [vmem:[#allocation7 + $0x70] sm:$0xff]  }
 0x613   : > { %v3284_v44 = vpop.f32.mrf.mxu1 }
 0x614   : > { %v3544_v44 = vld [vmem:[#allocation7 + $0x30] sm:$0xff]  }
 0x615   : > { %v1033_v45 = vpop.f32.mrf.mxu1 }
 0x616   : > { %v3545_v45 = vld [vmem:[#allocation7 + $0x68] sm:$0xff]  }
 0x617   : > { %v3285_v46 = vpop.f32.mrf.mxu1 }
 0x618   : > { %v3546_v46 = vld [vmem:[#allocation7 + $0x28] sm:$0xff]  }
 0x674   : > { %v1038_v47 = vpop.permute.xlu0 %1037 }
 0x675   : > { %v1048_v50 = vsel %vm588_vm1, %v4078_v26, %v1038_v47  ;;  %v3547_v47 = vld [vmem:[#allocation7 + $0x60] sm:$0xff]  }
 0x67c   : > { %v1042_v48 = vpop.permute.xlu1 %1041 }
 0x67d   : > { %v1050_v51 = vsel %vm1049_vm5, %v1048_v50, %v1042_v48  ;;  %v3548_v48 = vld [vmem:[#allocation7 + $0x20] sm:$0xff]   ;;  %v3549_v50 = vld [vmem:[#allocation7 + $0x58] sm:$0xff]  }
 0x684   : > { %v1046_v52 = vpop.permute.xlu0 %1045 }
 0x685   : > { %v1052_v53 = vsel %vm1051_vm6, %v1050_v51, %v1046_v52  ;;  %v3550_v51 = vld [vmem:[#allocation7 + $0x18] sm:$0xff]   ;;  %v3551_v52 = vld [vmem:[#allocation7 + $0x50] sm:$0xff]  }
 0x686   : > { %v1053_v54 = vpack.c.bf16 %v1052_v53, %v1052_v53  ;;  %v3552_v53 = vld [vmem:[#allocation7 + $0x10] sm:$0xff]  }
 0x688   : > { %3303 = vmatmul.mubr.bf16.vlgmr.msra.gmra.mxu0 %v1053_v54 }
 0x689   : > { %3141 = vmatpush3.bf16.msra.mxu0 %v3542_v42  ;;  %v1548_v42 = vsub.s32 7, %v4013_v29 }
 0x68a   : > { %3142 = vmatprep.subr.bf16.mxu0 %v3543_v43  ;;  %v1544_v43 = vrot.slane %v4147_v55, %v1543_v41 }
 0x68d   : > { %3143 = vmatpush3.bf16.msra.mxu0 %v3544_v44 }
 0x68e   : > { %3144 = vmatprep.subr.bf16.mxu0 %v3545_v45 }
 0x691   : > { %3145 = vmatpush3.bf16.msra.mxu0 %v3546_v46  ;;  %v1549_v46 = vrot.slane %v4147_v55, %v1548_v42 }
 0x692   : > { %3146 = vmatprep.subr.bf16.mxu0 %v3547_v47 }
 0x695   : > { %3147 = vmatpush3.bf16.msra.mxu0 %v3548_v48 }
 0x696   : > { %3148 = vmatprep.subr.bf16.mxu0 %v3549_v50 }
 0x699   : > { %3149 = vmatpush3.bf16.msra.mxu0 %v3550_v51  ;;  %v3557_v51 = vld [vmem:[#allocation2 + $0x168] ss:$12 sps:$4 sm:$0xff]  }
 0x69a   : > { %3150 = vmatprep.subr.bf16.mxu0 %v3551_v52  ;;  %v3559_v52 = vld [vmem:[#allocation2 + $0x16c] ss:$12 sps:$4 sm:$0xff]  }
 0x69d   : > { %3151 = vmatpush3.bf16.msra.mxu0 %v3552_v53  ;;  %v3560_v53 = vld [vmem:[#allocation2 + $0x170] ss:$12 sps:$4 sm:$0xff]  }
 0x748   : > { %v1156_v58 = vpop.f32.mrf.mxu0 }
 0x749   : > { %v1157_v59 = vadd.f32 %v1156_v58, %v1073_v57 }
 0x74a   : > { %v3304_v60 = vpop.f32.mrf.mxu0 }
 0x74b   : > { %v1162_v26 = vadd.f32 %v1157_v59, %v3997_v23  ;;  %v1199_v59 = vsub.s32 3, %v4013_v29  ;;  %v1204_v60 = vsub.s32 4, %v4013_v29 }
 0x74c   : > { %v1159_v61 = vpop.f32.mrf.mxu0 }
 0x74d   : > { %1163 = vadd.xlane.f32.xlu1 %v1162_v26 }
 0x74e   : > { %v3305_v62 = vpop.f32.mrf.mxu0 }
 0x7d6   : > { %v1164_v63 = vpop.xlane.xlu1 %1163 }
 0x7d7   : > { %v1166_v2 = vmul.f32 0.0078125, %v1164_v63  ;;  %v1205_v63 = vrot.slane %v4147_v55, %v1204_v60 }
 0x7d9   : > { %v1167_v3 = vsub.f32 %v1162_v26, %v1166_v2  ;;  %v1200_v26 = vrot.slane %v4147_v55, %v1199_v59 }
 0x7db   : > { %v1168_v4 = vmul.f32 %v1167_v3, %v1167_v3 }
 0x7dd   : > { %1169 = vadd.xlane.f32.xlu0 %v1168_v4 }
 0x866   : > { %v1170_v5 = vpop.xlane.xlu0 %1169 }
 0x867   : > { %v1171_v6 = vmul.f32 0.0078125, %v1170_v5  ;;  %v3553_v5 = vld [vmem:[#allocation7 + $0x48] sm:$0xff]  }
 0x868   : > { %3152 = vmatprep.subr.bf16.mxu0 %v3553_v5  ;;  %v3569_v5 = vld [vmem:[#allocation2 + $0x120] ss:$12 sps:$4 sm:$0xff]  }
 0x869   : > { %v1172_v7 = vadd.f32 1e-05, %v1171_v6  ;;  %v3554_v6 = vld [vmem:[#allocation7 + $0x8] sm:$0xff]  }
 0x86a   : > { %3153 = vmatpush3.bf16.msra.mxu0 %v3554_v6  ;;  %v3572_v6 = vld [vmem:[#allocation2 + $0x128] ss:$12 sps:$4 sm:$0xff]  }
 0x86b   : > { %3653 = vrsqrt.f32 %v1172_v7  ;;  %v3555_v7 = vld [vmem:[#allocation7 + $0x40] sm:$0xff]  }
 0x86c   : > { %3154 = vmatprep.subr.bf16.mxu0 %v3555_v7  ;;  %v3575_v7 = vld [vmem:[#allocation2 + $0x10c] ss:$12 sps:$4 sm:$0xff]  }
 0x878   : > { %v3654_v11 = vpop.eup %3653 }
 0x879   : > { %v1174_v12 = vmul.f32 %v3654_v11, %v1167_v3  ;;  %v1227_v11 = vrot.slane %v4026_v32, %v4153_v8  ;;  %v1391_v32 = vsub.s32 5, %v4013_v29  ;;  %v3013_v29 = vld [vmem:[%s4413_s6 + $0x18] sm:$0xff] }
 0x87b   : > { %v1179_v14 = vmul.f32 %v1178_v10, %v1174_v12  ;;  %v3556_v10 = vld [vmem:[#allocation7] sm:$0xff]   ;;  %v1231_v12 = vrot.slane %v4018_v30, %v4153_v8  ;;  %v1392_v30 = vrot.slane %v4147_v55, %v1391_v32 }
 0x87c   : > { %3155 = vmatpush3.bf16.msra.mxu0 %v3556_v10  ;;  %v3573_v10 = vld [vmem:[#allocation2 + $0x108] ss:$12 sps:$4 sm:$0xff]  }
 0x87d   : > { %v1184_v49 = vadd.f32 %v1183_v13, %v1179_v14  ;;  %3306 = vmatprep.subr.bf16.mxu0 %v3843_v1 }
 0x87f   : > { %v1185_v15 = vadd.f32 %v1184_v49, %v3997_v23  ;;  %v3526_v23 = vld [vmem:[#allocation5 + $0x40] ss:$8 sps:$4 sm:$0xff]  }
 0x880   : > { %1319 = vmatpush1.bf16.msra.mxu1 %v3526_v23 }
 0x881   : > { %1186 = vadd.xlane.f32.xlu0 %v1185_v15  ;;  %1320 = vmatprep.subr.bf16.mxu1 %v3531_v33 }
 0x884   : > { %1321 = vmatpush1.bf16.msra.mxu1 %v3529_v34 }
 0x885   : > { %1322 = vmatprep.subr.bf16.mxu1 %v3534_v35 }
 0x888   : > { %1323 = vmatpush1.bf16.msra.mxu1 %v3532_v36 }
 0x889   : > { %1324 = vmatprep.subr.bf16.mxu1 %v3537_v37 }
 0x88c   : > { %1325 = vmatpush1.bf16.msra.mxu1 %v3535_v38 }
 0x88d   : > { %1326 = vmatprep.subr.bf16.mxu1 %v3540_v39 }
 0x890   : > { %1327 = vmatpush1.bf16.msra.mxu1 %v3538_v40 }
 0x891   : > { %1754 = vmatprep.subr.bf16.mxu1 %v3559_v52 }
 0x90a   : > { %v1187_v20 = vpop.xlane.xlu0 %1186 }
 0x90b   : > { %v1188_v21 = vmul.f32 0.0078125, %v1187_v20 }
 0x90d   : > { %v1189_v22 = vsub.f32 %v1185_v15, %v1188_v21 }
 0x90f   : > { %v1190_v24 = vmul.f32 %v1189_v22, %v1189_v22 }
 0x911   : > { %1191 = vadd.xlane.f32.xlu1 %v1190_v24 }
 0x99a   : > { %v1192_v54 = vpop.xlane.xlu1 %1191 }
 0x99b   : > { %v1193_v57 = vmul.f32 0.0078125, %v1192_v54  ;;  %v3563_v54 = vld [vmem:[#allocation2 + $0x154] ss:$12 sps:$4 sm:$0xff]  }
 0x99d   : > { %v1194_v58 = vadd.f32 1e-05, %v1193_v57  ;;  %v3564_v57 = vld [vmem:[#allocation2 + $0x158] ss:$12 sps:$4 sm:$0xff]  }
 0x99f   : > { %3655 = vrsqrt.f32 %v1194_v58  ;;  %v3561_v58 = vld [vmem:[#allocation2 + $0x150] ss:$12 sps:$4 sm:$0xff]  }
 0x9ac   : > { %v3656_v61 = vpop.eup %3655 }
 0x9ad   : > { %v1196_v62 = vmul.f32 %v3656_v61, %v1189_v22 }
 0x9af   : > { %v1201_v2 = vmul.f32 %v1200_v26, %v1196_v62 }
 0x9b1   : > { %v1206_v3 = vadd.f32 %v1205_v63, %v1201_v2  ;;  %v3567_v63 = vld [vmem:[#allocation2 + $0x13c] ss:$12 sps:$4 sm:$0xff]   ;;  %v3565_v2 = vld [vmem:[#allocation2 + $0x138] ss:$12 sps:$4 sm:$0xff]  }
 0x9b3   : > { %v1207_v4 = vpack.c.bf16 %v1206_v3, %v1206_v3 }
 0x9b5   : > { %1345 = vmatmul.mubr.bf16.vlgmr.msra.gmra.mxu1 %v1207_v4  ;;  %v3571_v4 = vld [vmem:[#allocation2 + $0x124] ss:$12 sps:$4 sm:$0xff]  }
 0x9b6   : > { %1786 = vmatprep.mubr.bf16.mxu1 %v3842_v0  ;;  %1755 = vmatpush1.bf16.msra.mxu1 %v3557_v51 }
 0x9b7   : > { %1756 = vmatprep.subr.bf16.mxu1 %v3563_v54 }
 0x9ba   : > { %1757 = vmatpush1.bf16.msra.mxu1 %v3561_v58 }
 0x9bb   : > { %1758 = vmatprep.subr.bf16.mxu1 %v3567_v63 }
 0x9be   : > { %1759 = vmatpush1.bf16.msra.mxu1 %v3565_v2 }
 0x9bf   : > { %1760 = vmatprep.subr.bf16.mxu1 %v3571_v4 }
 0x9c2   : > { %1761 = vmatpush1.bf16.msra.mxu1 %v3569_v5 }
 0x9c3   : > { %1762 = vmatprep.subr.bf16.mxu1 %v3575_v7 }
 0x9c6   : > { %1763 = vmatpush1.bf16.msra.mxu1 %v3573_v10 }
 0xa75   : > { %v1346_v13 = vpop.f32.mrf.mxu1 }
 0xa76   : > { %v1347_v14 = vadd.f32 %v1346_v13, %v1227_v11  ;;  %v3576_v11 = vld [vmem:[#allocation2 + $0x110] ss:$12 sps:$4 sm:$0xff]  }
 0xa77   : > { %v1348_v49 = vpop.f32.mrf.mxu1  ;;  %v3577_v13 = vld [vmem:[#allocation2 + $0xf0] ss:$12 sps:$4 sm:$0xff]  }
 0xa78   : > { %v1349_v15 = vadd.f32 %v1348_v49, %v1231_v12  ;;  %v1353_v16 = vmax.f32 %v1347_v14, 0.0  ;;  %v3579_v12 = vld [vmem:[#allocation2 + $0xf4] ss:$12 sps:$4 sm:$0xff]   ;;  %v3580_v14 = vld [vmem:[#allocation2 + $0xf8] ss:$12 sps:$4 sm:$0xff]  }
 0xa79   : > { %v1350_v17 = vpop.f32.mrf.mxu1  ;;  %1764 = vmatprep.subr.bf16.mxu1 %v3579_v12  ;;  %v3583_v49 = vld [vmem:[#allocation2 + $0xdc] ss:$12 sps:$4 sm:$0xff]  }
 0xa7a   : > { %v1354_v18 = vmax.f32 %v1349_v15, 0.0  ;;  %v1355_v21 = vpack.c.bf16 %v1353_v16, %v1353_v16  ;;  %1765 = vmatpush1.bf16.msra.mxu1 %v3577_v13  ;;  %v3581_v15 = vld [vmem:[#allocation2 + $0xd8] ss:$12 sps:$4 sm:$0xff]   ;;  %v3584_v16 = vld [vmem:[#allocation2 + $0xe0] ss:$12 sps:$4 sm:$0xff]  }
 0xa7b   : > { %v1351_v19 = vpop.f32.mrf.mxu1  ;;  %1766 = vmatprep.subr.bf16.mxu1 %v3583_v49  ;;  %v3587_v17 = vld [vmem:[#allocation2 + $0xc4] ss:$12 sps:$4 sm:$0xff]  }
 0xa7c   : > { %v1356_v20 = vpack.c.bf16 %v1354_v18, %v1354_v18  ;;  %v3585_v18 = vld [vmem:[#allocation2 + $0xc0] ss:$12 sps:$4 sm:$0xff]   ;;  %v3588_v19 = vld [vmem:[#allocation2 + $0xc8] ss:$12 sps:$4 sm:$0xff]  }
 0xa7e   : > { %1521 = vmatprep.mubr.bf16.mxu0 %v1356_v20  ;;  %1767 = vmatpush1.bf16.msra.mxu1 %v3581_v15 }
 0xa7f   : > { %1522 = vmatmul.mubr.bf16.vlgmr.msra.gmra.mxu0 %v1355_v21  ;;  %1768 = vmatprep.subr.bf16.mxu1 %v3587_v17 }
 0xa80   : > { %3322 = vmatprep.mubr.msk.bf16.mxu0 %vm3844_vm0, %v3843_v1  ;;  %3307 = vmatpush3.bf16.msra.mxu0 %v3560_v53 }
 0xa81   : > { %3308 = vmatprep.subr.bf16.mxu0 %v3843_v1 }
 0xa82   : > { %1769 = vmatpush1.bf16.msra.mxu1 %v3585_v18 }
 0xa83   : > { %3326 = vmatprep.subr.bf16.mxu1 %v3843_v1 }
 0xa84   : > { %3309 = vmatpush3.bf16.msra.mxu0 %v3564_v57 }
 0xa85   : > { %3310 = vmatprep.subr.bf16.mxu0 %v3843_v1 }
 0xb3f   : > { %v3156_v22 = vpop.f32.mrf.mxu0 }
 0xb41   : > { %v3157_v24 = vpop.f32.mrf.mxu0 }
 0xb42   : > { %v3158_v25 = vadd.f32 %v3157_v24, %v3156_v22 }
 0xb43   : > { %v3159_v27 = vpop.f32.mrf.mxu0 }
 0xb44   : > { %v1524_v28 = vadd.f32 %v3158_v25, %v1392_v30  ;;  %v330_v30 = vld [vmem:[%s4413_s6 + $0x8] sm:$0xff] }
 0xb45   : > { %v3160_v23 = vpop.f32.mrf.mxu0  ;;  %v1566_v24 = vrot.slane %v330_v30, %v4021_v31 }
 0xb46   : > { %v1529_v33 = vadd.f32 %v1524_v28, %v1206_v3  ;;  %v1571_v28 = vrot.slane %v330_v30, %v4153_v8 }
 0xb48   : > { %1530 = vadd.xlane.f32.xlu0 %v1529_v33 }
 0xbd1   : > { %v1531_v34 = vpop.xlane.xlu0 %1530 }
 0xbd2   : > { %v1532_v35 = vmul.f32 0.0078125, %v1531_v34 }
 0xbd4   : > { %v1533_v36 = vsub.f32 %v1529_v33, %v1532_v35  ;;  %v4215_v35 = vld [vmem:[%s4412_s5 + $0x20] sm:$0xff] }
 0xbd6   : > { %v1534_v37 = vmul.f32 %v1533_v36, %v1533_v36 }
 0xbd8   : > { %1535 = vadd.xlane.f32.xlu1 %v1534_v37 }
 0xc61   : > { %v1536_v38 = vpop.xlane.xlu1 %1535 }
 0xc62   : > { %v1537_v39 = vmul.f32 0.0078125, %v1536_v38  ;;  %v3011_v38 = vld [vmem:[%s4412_s5 + $0x28] sm:$0xff] }
 0xc64   : > { %v1538_v40 = vadd.f32 1e-05, %v1537_v39 }
 0xc66   : > { %3657 = vrsqrt.f32 %v1538_v40  ;;  %v4225_v40 = vld [vmem:[%s4412_s5 + $0x18] sm:$0xff] }
 0xc73   : > { %v3658_v44 = vpop.eup %3657 }
 0xc74   : > { %v1540_v45 = vmul.f32 %v3658_v44, %v1533_v36  ;;  %v1621_v36 = vrot.slane %v4215_v35, %v4021_v31 }
 0xc76   : > { %v1545_v47 = vmul.f32 %v1544_v43, %v1540_v45  ;;  %v1625_v45 = vrot.slane %v3011_v38, %v4021_v31 }
 0xc78   : > { %v1550_v48 = vadd.f32 %v1549_v46, %v1545_v47 }
 0xc7a   : > { %v1551_v50 = vadd.f32 %v1550_v48, %v1206_v3  ;;  %v3568_v3 = vld [vmem:[#allocation2 + $0x140] ss:$12 sps:$4 sm:$0xff]  }
 0xc7b   : > { %3311 = vmatpush3.bf16.msra.mxu0 %v3568_v3 }
 0xc7c   : > { %1552 = vadd.xlane.f32.xlu0 %v1551_v50  ;;  %3312 = vmatprep.subr.bf16.mxu0 %v3843_v1 }
 0xc7f   : > { %3313 = vmatpush3.bf16.msra.mxu0 %v3572_v6 }
 0xc80   : > { %3314 = vmatprep.subr.bf16.mxu0 %v3843_v1 }
 0xc83   : > { %3315 = vmatpush3.bf16.msra.mxu0 %v3576_v11 }
 0xc84   : > { %3316 = vmatprep.subr.bf16.mxu0 %v3843_v1 }
 0xc87   : > { %3317 = vmatpush3.bf16.msra.mxu0 %v3580_v14 }
 0xc88   : > { %3318 = vmatprep.subr.bf16.mxu0 %v3843_v1 }
 0xc8b   : > { %3319 = vmatpush3.bf16.msra.mxu0 %v3584_v16 }
 0xc8c   : > { %3320 = vmatprep.subr.bf16.mxu0 %v3843_v1 }
 0xc8f   : > { %3321 = vmatpush3.bf16.msra.mxu0 %v3588_v19 }
 0xc90   : > { %3350 = vmatprep.subr.bf16.mxu0 %v3843_v1 }
 0xd05   : > { %v1553_v55 = vpop.xlane.xlu0 %1552 }
 0xd06   : > { %v1554_v26 = vmul.f32 0.0078125, %v1553_v55 }
 0xd08   : > { %v1555_v61 = vsub.f32 %v1551_v50, %v1554_v26  ;;  %v1617_v50 = vrot.slane %v4225_v40, %v4021_v31 }
 0xd0a   : > { %v1556_v62 = vmul.f32 %v1555_v61, %v1555_v61 }
 0xd0c   : > { %1557 = vadd.xlane.f32.xlu1 %v1556_v62 }
 0xd95   : > { %v1558_v20 = vpop.xlane.xlu1 %1557 }
 0xd96   : > { %v1559_v21 = vmul.f32 0.0078125, %v1558_v20 }
 0xd98   : > { %v1560_v22 = vadd.f32 1e-05, %v1559_v21 }
 0xd9a   : > { %3659 = vrsqrt.f32 %v1560_v22 }
 0xda7   : > { %v3660_v25 = vpop.eup %3659 }
 0xda8   : > { %v1562_v27 = vmul.f32 %v3660_v25, %v1555_v61 }
 0xdaa   : > { %v1567_v23 = vmul.f32 %v1566_v24, %v1562_v27 }
 0xdac   : > { %v4204_v33 = vadd.f32 %v1571_v28, %v1567_v23 }
 0xdae   : > { %v1580_v34 = vpack.c.bf16 %v4204_v33, %v4204_v33 }
 0xdb0   : > { %1787 = vmatmul.mubr.bf16.vlgmr.msra.gmra.mxu1 %v1580_v34  ;;  %3323 = vmatmul.mubr.bf16.vlgmr.msra.gmra.mxu0 %v1580_v34 }
 0xdb1   : > { %3328 = vmatprep.mubr.msk.bf16.mxu1 %vm3844_vm0, %v3843_v1  ;;  %3352 = vmatprep.mubr.msk.bf16.mxu0 %vm3844_vm0, %v3843_v1 }
 0xe70   : > { %v1788_v37 = vpop.f32.mrf.mxu1  ;;  %v1829_v39 = vpop.f32.mrf.mxu0 }
 0xe71   : > { %v1830_v54 = vadd.f32 %v1829_v39, %v1625_v45  ;;  %v1789_v58 = vadd.f32 %v1788_v37, %v1617_v50 }
 0xe72   : > { %v1790_v43 = vpop.f32.mrf.mxu1  ;;  %v3324_v44 = vpop.f32.mrf.mxu0 }
 0xe73   : > { %v1791_v46 = vadd.f32 %v1790_v43, %v1621_v36  ;;  %v4232_v55 = vpack.c.bf16 %v1830_v54, %v1830_v54  ;;  %v1835_v26 = vpack.c.bf16 %v1789_v58, %v1789_v58 }
 0xe74   : > { %v1792_v47 = vpop.f32.mrf.mxu1  ;;  %v1832_v48 = vpop.f32.mrf.mxu0 }
 0xe75   : > { %v1836_v51 = vpack.c.bf16 %v1791_v46, %v1791_v46  ;;  %v1902_v61 = vsel %vm653_vm2, %v4232_v55, 0 }
 0xe76   : > { %v1793_v52 = vpop.f32.mrf.mxu1  ;;  %v3325_v53 = vpop.f32.mrf.mxu0 }
 0xe77   : > { %v1842_v57 = vsel %vm588_vm1, %v1836_v51, 0 }
 0xe78   : > { %3327 = vmatpush3.bf16.xpose.msra.mxu1 %v1842_v57 }
 0xe79   : > { %3332 = vmatprep.subr.bf16.mxu1 %v3843_v1 }
 0xe7f   : > { %3329 = vmatmul.mubr.msk.bf16.vlgmr.msra.gmra.mxu1 %vm588_vm1, %v1835_v26 }
 0xe80   : > { %3333 = vmatpush3.bf16.msra.mxu1 %v1902_v61  ;;  %3334 = vmatprep.mubr.msk.bf16.mxu1 %vm3844_vm0, %v3843_v1 }
 0xe81   : > { %3338 = vmatprep.subr.bf16.mxu1 %v3843_v1 }
 0xf3f   : > { %v1878_v62 = vpop.f32.mrf.mxu1 }
 0xf40   : > { %v1884_v63 = vmul.f32 0.17677669, %v1878_v62 }
 0xf41   : > { %v3330_v2 = vpop.f32.mrf.mxu1 }
 0xf42   : > { %v1885_v3 = vadd.f32 %v1884_v63, %v4052_v56 }
 0xf43   : > { %v1881_v4 = vpop.f32.mrf.mxu1 }
 0xf44   : > { %v1886_v5 = vsel %vm637_vm4, %v1885_v3, -inf }
 0xf45   : > { %1887 = vmax.xlane.f32.xlu0 %v1886_v5  ;;  %v3331_v6 = vpop.f32.mrf.mxu1 }
 0xf5b   : > { %1948 = vrot.lane.b32.xlu0 %v1836_v51, %s3845_s20 }
 0xf5f   : > { %2059 = vrot.lane.b32.xlu0 %v1835_v26, %s3846_s21 }
 0xf63   : > { %2171 = vrot.lane.b32.xlu0 %v1835_v26, %s3847_s22 }
 0xfce   : > { %v1888_v7 = vpop.xlane.xlu0 %1887 }
 0xfcf   : > { %v1889_v10 = vsub.f32 %v1885_v3, %v1888_v7 }
 0xfd1   : > { %v1890_v11 = vmul.f32 1.442695, %v1889_v10 }
 0xfd2   : > { %v1949_v17 = vpop.permute.xlu0 %1948 }
 0xfd3   : > { %3661 = vpow2.f32 %v1890_v11  ;;  %v1954_v24 = vsel %vm588_vm1, %v1949_v17, 0 }
 0xfd6   : > { %v2060_v21 = vpop.permute.xlu0 %2059 }
 0xfda   : > { %v2172_v25 = vpop.permute.xlu0 %2171 }
 0xfe0   : > { %v3662_v12 = vpop.eup %3661 }
 0xfe1   : > { %v1892_v13 = vsel %vm637_vm4, %v3662_v12, 0.0 }
 0xfe2   : > { %1893 = vadd.xlane.f32.xlu1 %v1892_v13 }
 0xff3   : > { %1945 = vrot.lane.b32.xlu1 %v1835_v26, %s3845_s20 }
 0xff7   : > { %2061 = vrot.lane.b32.xlu1 %v1836_v51, %s3846_s21 }
 0xffb   : > { %2173 = vrot.lane.b32.xlu1 %v1836_v51, %s3847_s22 }
0x106b   : > { %v1894_v14 = vpop.xlane.xlu1 %1893 }
0x106c   : > { %3663 = vrcp.f32 %v1894_v14 }
0x106f   : > { %v1946_v49 = vpop.permute.xlu1 %1945 }
0x1073   : > { %v2062_v15 = vpop.permute.xlu1 %2061 }
0x1074   : > { %v2067_v16 = vsel %vm588_vm1, %v2062_v15, 0 }
0x1075   : > { %3351 = vmatpush3.bf16.xpose.msra.mxu0 %v2067_v16 }
0x1076   : > { %3362 = vmatprep.subr.bf16.mxu0 %v3843_v1 }
0x1077   : > { %v2174_v19 = vpop.permute.xlu1 %2173 }
0x1078   : > { %v2179_v22 = vsel %vm588_vm1, %v2174_v19, 0 }
0x1079   : > { %v3664_v18 = vpop.eup %3663 }
0x107a   : > { %v1896_v20 = vmul.f32 %v3664_v18, %v3662_v12 }
0x107c   : > { %3353 = vmatmul.mubr.msk.bf16.vlgmr.msra.gmra.mxu0 %vm588_vm1, %v2060_v21  ;;  %v1897_v30 = vpack.c.bf16 %v1896_v20, %v1896_v20 }
0x107d   : > { %3363 = vmatpush3.bf16.xpose.msra.mxu0 %v2179_v22  ;;  %3364 = vmatprep.mubr.msk.bf16.mxu0 %vm3844_vm0, %v3843_v1 }
0x107e   : > { %3335 = vmatmul.mubr.msk.bf16.vlgmr.msra.gmra.mxu1 %vm637_vm4, %v1897_v30  ;;  %3374 = vmatprep.subr.bf16.mxu0 %v3843_v1 }
0x107f   : > { %3339 = vmatpush3.bf16.xpose.msra.mxu1 %v1954_v24  ;;  %3340 = vmatprep.mubr.msk.bf16.mxu1 %vm3844_vm0, %v3843_v1 }
0x1080   : > { %3344 = vmatprep.subr.bf16.mxu1 %v3843_v1 }
0x1084   : > { %3365 = vmatmul.mubr.msk.bf16.vlgmr.msra.gmra.mxu0 %vm588_vm1, %v2172_v25 }
0x1085   : > { %3390 = vmatprep.mubr.msk.bf16.mxu0 %vm3844_vm0, %v3843_v1 }
0x1086   : > { %3341 = vmatmul.mubr.msk.bf16.vlgmr.msra.gmra.mxu1 %vm588_vm1, %v1946_v49 }
0x1087   : > { %3346 = vmatprep.mubr.msk.bf16.mxu1 %vm3844_vm0, %v3843_v1 }
0x113c   : > { %v2103_v27 = vpop.f32.mrf.mxu0 }
0x113d   : > { %v2109_v28 = vmul.f32 0.17677669, %v2103_v27 }
0x113e   : > { %v4267_v23 = vpop.f32.mrf.mxu1  ;;  %v3354_v34 = vpop.f32.mrf.mxu0 }
0x113f   : > { %v2110_v36 = vadd.f32 %v2109_v28, %v4052_v56 }
0x1140   : > { %v3336_v37 = vpop.f32.mrf.mxu1  ;;  %v2106_v38 = vpop.f32.mrf.mxu0 }
0x1141   : > { %v2111_v39 = vsel %vm637_vm4, %v2110_v36, -inf }
0x1142   : > { %2112 = vmax.xlane.f32.xlu0 %v2111_v39  ;;  %v1941_v43 = vpop.f32.mrf.mxu1  ;;  %v3355_v44 = vpop.f32.mrf.mxu0 }
0x1143   : > { %v3589_v44 = vld [vmem:[%s4409_s2 + $0x78] sm:$0xff]  }
0x1144   : > { %v3337_v45 = vpop.f32.mrf.mxu1  ;;  %v2215_v46 = vpop.f32.mrf.mxu0  ;;  %3375 = vmatpush3.bf16.msra.mxu0 %v3589_v44  ;;  %v3600_v44 = vld [vmem:[#allocation5 + $0xe0] ss:$8 sps:$4 sm:$0xff]  }
0x1145   : > { %v2221_v47 = vmul.f32 0.17677669, %v2215_v46  ;;  %v3590_v45 = vld [vmem:[%s4409_s2 + $0x70] sm:$0xff]   ;;  %3376 = vmatprep.subr.bf16.mxu0 %v3843_v1  ;;  %v3591_v46 = vld [vmem:[%s4409_s2 + $0x68] sm:$0xff]  }
0x1146   : > { %v1990_v48 = vpop.f32.mrf.mxu1  ;;  %v3366_v50 = vpop.f32.mrf.mxu0 }
0x1147   : > { %v1996_v51 = vmul.f32 0.17677669, %v1990_v48  ;;  %v2222_v52 = vadd.f32 %v2221_v47, %v4052_v56  ;;  %v3593_v47 = vld [vmem:[%s4409_s2 + $0x58] sm:$0xff]   ;;  %v3594_v48 = vld [vmem:[%s4409_s2 + $0x50] sm:$0xff]   ;;  %v3595_v50 = vld [vmem:[%s4409_s2 + $0x48] sm:$0xff]  }
0x1148   : > { %v3342_v53 = vpop.f32.mrf.mxu1  ;;  %v2218_v54 = vpop.f32.mrf.mxu0  ;;  %3377 = vmatpush3.bf16.msra.mxu0 %v3590_v45 }
0x1149   : > { %v2223_v57 = vsel %vm637_vm4, %v2222_v52, -inf  ;;  %v1997_v58 = vadd.f32 %v1996_v51, %v4052_v56  ;;  %3378 = vmatprep.subr.bf16.mxu0 %v3843_v1  ;;  %v3596_v53 = vld [vmem:[%s4409_s2 + $0x40] sm:$0xff]  }
0x114a   : > { %2224 = vmax.xlane.f32.xlu0 %v2223_v57  ;;  %v1993_v26 = vpop.f32.mrf.mxu1  ;;  %v3367_v61 = vpop.f32.mrf.mxu0 }
0x114b   : > { %v1998_v62 = vsel %vm637_vm4, %v1997_v58, -inf }
0x114c   : > { %1999 = vmax.xlane.f32.xlu1 %v1998_v62  ;;  %v3343_v63 = vpop.f32.mrf.mxu1  ;;  %3379 = vmatpush3.bf16.msra.mxu0 %v3591_v46 }
0x114d   : > { %3380 = vmatprep.subr.bf16.mxu0 %v3843_v1 }
0x11cb   : > { %v2113_v2 = vpop.xlane.xlu0 %2112 }
0x11cc   : > { %v2114_v3 = vsub.f32 %v2110_v36, %v2113_v2 }
0x11ce   : > { %v2115_v4 = vmul.f32 1.442695, %v2114_v3 }
0x11d0   : > { %3665 = vpow2.f32 %v2115_v4 }
0x11d3   : > { %v2225_v5 = vpop.xlane.xlu0 %2224 }
0x11d4   : > { %v2226_v6 = vsub.f32 %v2222_v52, %v2225_v5 }
0x11d5   : > { %v2000_v7 = vpop.xlane.xlu1 %1999 }
0x11d6   : > { %v2227_v10 = vmul.f32 1.442695, %v2226_v6  ;;  %v2001_v11 = vsub.f32 %v1997_v58, %v2000_v7 }
0x11d8   : > { %3667 = vpow2.f32 %v2227_v10  ;;  %v2002_v12 = vmul.f32 1.442695, %v2001_v11 }
0x11da   : > { %3669 = vpow2.f32 %v2002_v12 }
0x11dd   : > { %v3666_v56 = vpop.eup %3665 }
0x11de   : > { %v2117_v13 = vsel %vm637_vm4, %v3666_v56, 0.0 }
0x11df   : > { %2118 = vadd.xlane.f32.xlu0 %v2117_v13 }
0x11e5   : > { %v3668_v14 = vpop.eup %3667 }
0x11e6   : > { %v2229_v49 = vsel %vm637_vm4, %v3668_v14, 0.0 }
0x11e7   : > { %v3670_v15 = vpop.eup %3669  ;;  %2230 = vadd.xlane.f32.xlu1 %v2229_v49 }
0x11e8   : > { %v2004_v16 = vsel %vm637_vm4, %v3670_v15, 0.0 }
0x11eb   : > { %2005 = vadd.xlane.f32.xlu1 %v2004_v16 }
0x11f5   : > { %2011 = vrot.lane.b32.xlu0 %v4232_v55, %s3845_s20 }
0x11fc   : > { %2123 = vrot.lane.b32.xlu1 %v4232_v55, %s3846_s21 }
0x1200   : > { %2235 = vrot.lane.b32.xlu1 %v4232_v55, %s3847_s22 }
0x1268   : > { %v2119_v17 = vpop.xlane.xlu0 %2118 }
0x126c   : > { %v2012_v18 = vpop.permute.xlu0 %2011 }
0x126d   : > { %v2017_v19 = vsel %vm653_vm2, %v2012_v18, 0 }
0x126e   : > { %3345 = vmatpush3.bf16.msra.mxu1 %v2017_v19 }
0x126f   : > { %3356 = vmatprep.subr.bf16.mxu1 %v3843_v1 }
0x1270   : > { %v2231_v20 = vpop.xlane.xlu1 %2230 }
0x1274   : > { %v2006_v21 = vpop.xlane.xlu1 %2005 }
0x1275   : > { %3671 = vrcp.f32 %v2006_v21 }
0x1276   : > { %3673 = vrcp.f32 %v2119_v17 }
0x1277   : > { %3675 = vrcp.f32 %v2231_v20 }
0x1278   : > { %v2124_v24 = vpop.permute.xlu1 %2123 }
0x1279   : > { %v2129_v28 = vsel %vm653_vm2, %v2124_v24, 0 }
0x127c   : > { %v2236_v34 = vpop.permute.xlu1 %2235 }
0x127d   : > { %v2241_v38 = vsel %vm653_vm2, %v2236_v34, 0 }
0x1282   : > { %v3672_v22 = vpop.eup %3671 }
0x1283   : > { %v2008_v30 = vmul.f32 %v3672_v22, %v3670_v15  ;;  %v3674_v27 = vpop.eup %3673 }
0x1284   : > { %v2121_v55 = vmul.f32 %v3674_v27, %v3666_v56  ;;  %v3676_v37 = vpop.eup %3675  ;;  %v4338_v56 = vld [vmem:[%s4413_s6 + $0x10] sm:$0xff] }
0x1285   : > { %v2009_v25 = vpack.c.bf16 %v2008_v30, %v2008_v30  ;;  %v2233_v39 = vmul.f32 %v3676_v37, %v3668_v14  ;;  %v2319_v13 = vrot.slane %v4338_v56, %v4021_v31 }
0x1286   : > { %v2122_v36 = vpack.c.bf16 %v2121_v55, %v2121_v55  ;;  %v2428_v55 = vrot.slane %v4338_v56, %v1182_v9  ;;  %v3603_v9 = vld [vmem:[#allocation5 + $0xd0] ss:$8 sps:$4 sm:$0xff]  }
0x1287   : > { %3347 = vmatmul.mubr.msk.bf16.vlgmr.msra.gmra.mxu1 %vm637_vm4, %v2009_v25  ;;  %v2234_v43 = vpack.c.bf16 %v2233_v39, %v2233_v39  ;;  %v2423_v25 = vrot.slane %v4338_v56, %v4153_v8  ;;  %v3599_v39 = vld [vmem:[#allocation5 + $0xf4] ss:$8 sps:$4 sm:$0xff]  }
0x1288   : > { %3357 = vmatpush3.bf16.msra.mxu1 %v2129_v28  ;;  %3358 = vmatprep.mubr.msk.bf16.mxu1 %vm3844_vm0, %v3843_v1 }
0x1289   : > { %3368 = vmatprep.subr.bf16.mxu1 %v3843_v1 }
0x128f   : > { %3359 = vmatmul.mubr.msk.bf16.vlgmr.msra.gmra.mxu1 %vm637_vm4, %v2122_v36 }
0x1290   : > { %3369 = vmatpush3.bf16.msra.mxu1 %v2241_v38  ;;  %3370 = vmatprep.mubr.msk.bf16.mxu1 %vm3844_vm0, %v3843_v1  ;;  %v3597_v38 = vld [vmem:[#allocation5 + $0xf0] ss:$8 sps:$4 sm:$0xff]  }
0x1291   : > { %2558 = vmatprep.subr.bf16.mxu1 %v3599_v39 }
0x1297   : > { %3371 = vmatmul.mubr.msk.bf16.vlgmr.msra.gmra.mxu1 %vm637_vm4, %v2234_v43  ;;  %v3602_v43 = vld [vmem:[#allocation5 + $0xe4] ss:$8 sps:$4 sm:$0xff]  }
0x1298   : > { %2590 = vmatprep.mubr.bf16.mxu1 %v3842_v0  ;;  %v3592_v0 = vld [vmem:[%s4409_s2 + $0x60] sm:$0xff]   ;;  %2559 = vmatpush1.bf16.msra.mxu1 %v3597_v38 }
0x1299   : > { %3381 = vmatpush3.bf16.msra.mxu0 %v3592_v0  ;;  %2560 = vmatprep.subr.bf16.mxu1 %v3602_v43 }
0x129a   : > { %3382 = vmatprep.subr.bf16.mxu0 %v3843_v1 }
0x129c   : > { %2561 = vmatpush1.bf16.msra.mxu1 %v3600_v44 }
0x129d   : > { %3383 = vmatpush3.bf16.msra.mxu0 %v3593_v47 }
0x129e   : > { %3384 = vmatprep.subr.bf16.mxu0 %v3843_v1 }
0x12a1   : > { %3385 = vmatpush3.bf16.msra.mxu0 %v3594_v48  ;;  %v3605_v48 = vld [vmem:[#allocation5 + $0xd4] ss:$8 sps:$4 sm:$0xff]  }
0x12a2   : > { %3386 = vmatprep.subr.bf16.mxu0 %v3843_v1  ;;  %2562 = vmatprep.subr.bf16.mxu1 %v3605_v48 }
0x12a3   : > { %2563 = vmatpush1.bf16.msra.mxu1 %v3603_v9 }
0x12a5   : > { %3387 = vmatpush3.bf16.msra.mxu0 %v3595_v50  ;;  %v3608_v50 = vld [vmem:[#allocation5 + $0xc4] ss:$8 sps:$4 sm:$0xff]  }
0x12a6   : > { %3388 = vmatprep.subr.bf16.mxu0 %v3843_v1  ;;  %2564 = vmatprep.subr.bf16.mxu1 %v3608_v50 }
0x12a9   : > { %3389 = vmatpush3.bf16.msra.mxu0 %v3596_v53  ;;  %v3614_v53 = vld [vmem:[#allocation5 + $0xa4] ss:$8 sps:$4 sm:$0xff]  }
0x1347   : > { %v2053_v51 = vpop.f32.mrf.mxu1 }
0x1348   : > { %2284 = vrot.lane.b32.xlu0 %v2053_v51, %s3847_s22  ;;  %v3611_v51 = vld [vmem:[#allocation5 + $0xb4] ss:$8 sps:$4 sm:$0xff]  }
0x1349   : > { %v3348_v52 = vpop.f32.mrf.mxu1 }
0x134a   : > { %v3609_v52 = vld [vmem:[#allocation5 + $0xb0] ss:$8 sps:$4 sm:$0xff]  }
0x134b   : > { %v2056_v54 = vpop.f32.mrf.mxu1 }
0x134c   : > { %v3612_v54 = vld [vmem:[#allocation5 + $0xa0] ss:$8 sps:$4 sm:$0xff]  }
0x134d   : > { %v3349_v57 = vpop.f32.mrf.mxu1 }
0x134e   : > { %v3617_v57 = vld [vmem:[#allocation5 + $0x94] ss:$8 sps:$4 sm:$0xff]  }
0x134f   : > { %v2165_v58 = vpop.f32.mrf.mxu1 }
0x1350   : > { %2288 = vrot.lane.b32.xlu1 %v2165_v58, %s3846_s21  ;;  %v3615_v58 = vld [vmem:[#allocation5 + $0x90] ss:$8 sps:$4 sm:$0xff]   ;;  %s3849_s21 = smov [#allocation8]  }
0x1351   : > { %v3360_v26 = vpop.f32.mrf.mxu1  ;;  %s3767_s22 = sshll.u32 %s3849_s21, 4  ;;  %s3768_s22 = int_to_ptr.vmem [resolvable:$false] %s3767_s22 }
0x1352   : > { %v3620_v26 = vld [vmem:[#allocation5 + $0x84] ss:$8 sps:$4 sm:$0xff]   ;;  %s3769_s28 = scalar_lea.vmem %s3768_s22, 256 }
0x1353   : > { %v2168_v61 = vpop.f32.mrf.mxu1 }
0x1354   : > { %v3618_v61 = vld [vmem:[#allocation5 + $0x80] ss:$8 sps:$4 sm:$0xff]  }
0x1355   : > { %v3361_v62 = vpop.f32.mrf.mxu1 }
0x1356   : > { %v3621_v62 = vld [vmem:[#allocation7 + $0xf8] sm:$0xff]  }
0x1357   : > { %v2277_v63 = vpop.f32.mrf.mxu1  ;;  %3196 = vmatprep.subr.bf16.mxu0 %v3621_v62 }
0x1358   : > { %2292 = vrot.lane.b32.xlu0 %v2277_v63, %s3845_s20  ;;  %v3622_v63 = vld [vmem:[#allocation7 + $0xb8] sm:$0xff]   ;;  %s311_s20 = sand.u32 1, %s3823_s25  }
0x1359   : > { %v3372_v2 = vpop.f32.mrf.mxu1  ;;  %s2935_s23 = sshll.u32 %s311_s20, 3  ;;  %s2822_s15 = scalar_lea.sflag [#allocation4], %s311_s20 }
0x135a   : > { %v3623_v2 = vld [vmem:[#allocation7 + $0xf0] sm:$0xff]   ;;  %s313_s29 = scalar_lea.vmem [#allocation8], %s2935_s23 }
0x135b   : > { %v2280_v3 = vpop.f32.mrf.mxu1  ;;  %s2835_s8 = sshll.u32 %s313_s29, 4  ;;  %s2836_s8 = int_to_ptr.vmem [resolvable:$true] %s2835_s8 }
0x135c   : > { %v3624_v3 = vld [vmem:[#allocation7 + $0xb0] sm:$0xff]   ;;  %s3763_s19 = scalar_lea.vmem %s2836_s8, 128  ;;  %p3770_p6 = scmp.lt.s32.totalorder %s2836_s8, %s3768_s22 }
0x135d   : > { %v3373_v4 = vpop.f32.mrf.mxu1  ;;  %p3764_p12 = scmp.ne.s32.totalorder %s2836_s8, %s3763_s19  ;;  %p3771_p9 = scmp.lt.s32.totalorder %s3769_s28, %s3763_s19 }
0x135e   : > { %v3625_v4 = vld [vmem:[#allocation7 + $0xe8] sm:$0xff]  }
0x135f   : > { %p3765_p4 = pnand %p3764_p12, %p3928_p5  ;;  %p3772_p8 = por %p3771_p9, %p3770_p6 }
0x1361   : > { %p3766_p7 = pneg %p3765_p4 }
0x1363   : > { %p3773_p11 = pnand %p3772_p8, %p3766_p7 }
0x13ba   : > { %v2285_v1 = vpop.permute.xlu0 %2284 }
0x13bb   : > { %v2295_v6 = vsel %vm588_vm1, %v4267_v23, %v2285_v1  ;;  %v3626_v1 = vld [vmem:[#allocation7 + $0xa8] sm:$0xff]  }
0x13c2   : > { %v2289_v5 = vpop.permute.xlu1 %2288 }
0x13c3   : > { %v2296_v7 = vsel %vm1049_vm5, %v2295_v6, %v2289_v5  ;;  %v3627_v5 = vld [vmem:[#allocation7 + $0xe0] sm:$0xff]  }
0x13c4   : > { %v3628_v6 = vld [vmem:[#allocation7 + $0xa0] sm:$0xff]  }
0x13ca   : > { %v2293_v10 = vpop.permute.xlu0 %2292 }
0x13cb   : > { %v2297_v11 = vsel %vm1051_vm6, %v2296_v7, %v2293_v10  ;;  %v3629_v7 = vld [vmem:[#allocation7 + $0xd8] sm:$0xff]  }
0x13cc   : > { %v2298_v12 = vpack.c.bf16 %v2297_v11, %v2297_v11  ;;  %v3630_v10 = vld [vmem:[#allocation7 + $0x98] sm:$0xff]   ;;  %v3631_v11 = vld [vmem:[#allocation7 + $0xd0] sm:$0xff]  }
0x13ce   : > { %3391 = vmatmul.mubr.bf16.vlgmr.msra.gmra.mxu0 %v2298_v12  ;;  %v3632_v12 = vld [vmem:[#allocation7 + $0x90] sm:$0xff]  }
0x13cf   : > { %3197 = vmatpush3.bf16.msra.mxu0 %v3622_v63 }
0x13d0   : > { %3198 = vmatprep.subr.bf16.mxu0 %v3623_v2 }
0x13d3   : > { %3199 = vmatpush3.bf16.msra.mxu0 %v3624_v3 }
0x13d4   : > { %3200 = vmatprep.subr.bf16.mxu0 %v3625_v4 }
0x13d7   : > { %3201 = vmatpush3.bf16.msra.mxu0 %v3626_v1 }
0x13d8   : > { %3202 = vmatprep.subr.bf16.mxu0 %v3627_v5 }
0x13db   : > { %3203 = vmatpush3.bf16.msra.mxu0 %v3628_v6 }
0x13dc   : > { %3204 = vmatprep.subr.bf16.mxu0 %v3629_v7 }
0x13df   : > { %3205 = vmatpush3.bf16.msra.mxu0 %v3630_v10  ;;  %v2818_v10 = vrot.slane %v3013_v29, %v4153_v8 }
0x13e0   : > { %3206 = vmatprep.subr.bf16.mxu0 %v3631_v11 }
0x13e3   : > { %3207 = vmatpush3.bf16.msra.mxu0 %v3632_v12 }
0x148e   : > { %v2402_v14 = vpop.f32.mrf.mxu0 }
0x148f   : > { %v2403_v49 = vadd.f32 %v2402_v14, %v2319_v13 }
0x1490   : > { %v3392_v15 = vpop.f32.mrf.mxu0 }
0x1491   : > { %v2408_v23 = vadd.f32 %v2403_v49, %v4204_v33  ;;  %v2445_v15 = vrot.slane %v4338_v56, %v1199_v59  ;;  %v2473_v59 = vrot.slane %v4225_v40, %v4153_v8  ;;  %v2639_v40 = vrot.slane %v4338_v56, %v1391_v32 }
0x1492   : > { %v2405_v16 = vpop.f32.mrf.mxu0  ;;  %v2791_v32 = vrot.slane %v4338_v56, %v1543_v41 }
0x1493   : > { %2409 = vadd.xlane.f32.xlu1 %v2408_v23 }
0x1494   : > { %v3393_v17 = vpop.f32.mrf.mxu0 }
0x1495   : > { %v2450_v17 = vrot.slane %v4338_v56, %v1204_v60 }
0x151c   : > { %v2410_v18 = vpop.xlane.xlu1 %2409 }
0x151d   : > { %v2411_v19 = vmul.f32 0.0078125, %v2410_v18 }
0x151f   : > { %v2412_v20 = vsub.f32 %v2408_v23, %v2411_v19 }
0x1521   : > { %v2413_v21 = vmul.f32 %v2412_v20, %v2412_v20 }
0x1523   : > { %2414 = vadd.xlane.f32.xlu0 %v2413_v21  ;;  %v3633_v21 = vld [vmem:[#allocation7 + $0xc8] sm:$0xff]  }
0x1524   : > { %3208 = vmatprep.subr.bf16.mxu0 %v3633_v21 }
0x15ac   : > { %v2415_v22 = vpop.xlane.xlu0 %2414 }
0x15ad   : > { %v2416_v30 = vmul.f32 0.0078125, %v2415_v22  ;;  %v3634_v22 = vld [vmem:[#allocation7 + $0x88] sm:$0xff]  }
0x15ae   : > { %3209 = vmatpush3.bf16.msra.mxu0 %v3634_v22 }
0x15af   : > { %v2417_v24 = vadd.f32 1e-05, %v2416_v30  ;;  %v3635_v30 = vld [vmem:[#allocation7 + $0xc0] sm:$0xff]  }
0x15b0   : > { %3210 = vmatprep.subr.bf16.mxu0 %v3635_v30 }
0x15b1   : > { %3677 = vrsqrt.f32 %v2417_v24  ;;  %v3636_v24 = vld [vmem:[#allocation7 + $0x80] sm:$0xff]  }
0x15b2   : > { %3211 = vmatpush3.bf16.msra.mxu0 %v3636_v24 }
0x15be   : > { %v3678_v27 = vpop.eup %3677 }
0x15bf   : > { %v2419_v28 = vmul.f32 %v3678_v27, %v2412_v20 }
0x15c1   : > { %v2424_v34 = vmul.f32 %v2423_v25, %v2419_v28  ;;  %v2477_v25 = vrot.slane %v4215_v35, %v4153_v8 }
0x15c3   : > { %v2429_v36 = vadd.f32 %v2428_v55, %v2424_v34 }
0x15c5   : > { %v2430_v37 = vadd.f32 %v2429_v36, %v4204_v33  ;;  %v3606_v33 = vld [vmem:[#allocation5 + $0xc0] ss:$8 sps:$4 sm:$0xff]  }
0x15c6   : > { %2565 = vmatpush1.bf16.msra.mxu1 %v3606_v33 }
0x15c7   : > { %2431 = vadd.xlane.f32.xlu0 %v2430_v37  ;;  %2566 = vmatprep.subr.bf16.mxu1 %v3611_v51 }
0x15ca   : > { %2567 = vmatpush1.bf16.msra.mxu1 %v3609_v52 }
0x15cb   : > { %2568 = vmatprep.subr.bf16.mxu1 %v3614_v53 }
0x15ce   : > { %2569 = vmatpush1.bf16.msra.mxu1 %v3612_v54 }
0x15cf   : > { %2570 = vmatprep.subr.bf16.mxu1 %v3617_v57 }
0x15d2   : > { %2571 = vmatpush1.bf16.msra.mxu1 %v3615_v58 }
0x15d3   : > { %2572 = vmatprep.subr.bf16.mxu1 %v3620_v26  ;;  %v2796_v26 = vrot.slane %v4338_v56, %v1548_v42  ;;  %v2813_v42 = vrot.slane %v3013_v29, %v4021_v31 }
0x15d6   : > { %2573 = vmatpush1.bf16.msra.mxu1 %v3618_v61 }
0x1650   : > { %v2432_v45 = vpop.xlane.xlu0 %2431 }
0x1651   : > { %v2433_v46 = vmul.f32 0.0078125, %v2432_v45 }
0x1653   : > { %v2434_v0 = vsub.f32 %v2430_v37, %v2433_v46 }
0x1655   : > { %v2435_v47 = vmul.f32 %v2434_v0, %v2434_v0 }
0x1657   : > { %2436 = vadd.xlane.f32.xlu1 %v2435_v47 }
0x16e0   : > { %v2437_v13 = vpop.xlane.xlu1 %2436 }
0x16e1   : > { %v2438_v14 = vmul.f32 0.0078125, %v2437_v13 }
0x16e3   : > { %v2439_v49 = vadd.f32 1e-05, %v2438_v14 }
0x16e5   : > { %3679 = vrsqrt.f32 %v2439_v49 }
0x16f2   : > { %v3680_v23 = vpop.eup %3679 }
0x16f3   : > { %v2441_v16 = vmul.f32 %v3680_v23, %v2434_v0 }
0x16f5   : > { %v2446_v18 = vmul.f32 %v2445_v15, %v2441_v16 }
0x16f7   : > { %v2451_v19 = vadd.f32 %v2450_v17, %v2446_v18 }
0x16f9   : > { %v2452_v20 = vpack.c.bf16 %v2451_v19, %v2451_v19 }
0x16fb   : > { %2591 = vmatmul.mubr.bf16.vlgmr.msra.gmra.mxu1 %v2452_v20 }
0x17bb   : > { %v2592_v27 = vpop.f32.mrf.mxu1 }
0x17bc   : > { %v2593_v60 = vadd.f32 %v2592_v27, %v2473_v59 }
0x17bd   : > { %v2594_v28 = vpop.f32.mrf.mxu1 }
0x17be   : > { %v2595_v55 = vadd.f32 %v2594_v28, %v2477_v25  ;;  %v2599_v34 = vmax.f32 %v2593_v60, 0.0 }
0x17bf   : > { %v2596_v36 = vpop.f32.mrf.mxu1 }
0x17c0   : > { %v2600_v37 = vmax.f32 %v2595_v55, 0.0  ;;  %v2601_v43 = vpack.c.bf16 %v2599_v34, %v2599_v34 }
0x17c1   : > { %v2597_v38 = vpop.f32.mrf.mxu1 }
0x17c2   : > { %v2602_v39 = vpack.c.bf16 %v2600_v37, %v2600_v37 }
0x17c4   : > { %2768 = vmatprep.mubr.bf16.mxu0 %v2602_v39 }
0x17c5   : > { %2769 = vmatmul.mubr.bf16.vlgmr.msra.gmra.mxu0 %v2601_v43 }
0x1885   : > { %v3212_v44 = vpop.f32.mrf.mxu0 }
0x1887   : > { %v3213_v45 = vpop.f32.mrf.mxu0 }
0x1888   : > { %v3214_v46 = vadd.f32 %v3213_v45, %v3212_v44 }
0x1889   : > { %v3215_v35 = vpop.f32.mrf.mxu0 }
0x188a   : > { %v2771_v0 = vadd.f32 %v3214_v46, %v2639_v40 }
0x188b   : > { %v3216_v47 = vpop.f32.mrf.mxu0 }
0x188c   : > { %v2776_v48 = vadd.f32 %v2771_v0, %v2451_v19 }
0x188e   : > { %2777 = vadd.xlane.f32.xlu0 %v2776_v48 }
0x1917   : > { %v2778_v9 = vpop.xlane.xlu0 %2777 }
0x1918   : > { %v2779_v50 = vmul.f32 0.0078125, %v2778_v9 }
0x191a   : > { %v2780_v33 = vsub.f32 %v2776_v48, %v2779_v50 }
0x191c   : > { %v2781_v51 = vmul.f32 %v2780_v33, %v2780_v33 }
0x191e   : > { %2782 = vadd.xlane.f32.xlu1 %v2781_v51 }
0x19a7   : > { %v2783_v52 = vpop.xlane.xlu1 %2782 }
0x19a8   : > { %v2784_v53 = vmul.f32 0.0078125, %v2783_v52 }
0x19aa   : > { %v2785_v54 = vadd.f32 1e-05, %v2784_v53 }
0x19ac   : > { %3681 = vrsqrt.f32 %v2785_v54 }
0x19b9   : > { %v3682_v57 = vpop.eup %3681 }
0x19ba   : > { %v2787_v58 = vmul.f32 %v3682_v57, %v2780_v33 }
0x19bc   : > { %v2792_v61 = vmul.f32 %v2791_v32, %v2787_v58 }
0x19be   : > { %v2797_v62 = vadd.f32 %v2796_v26, %v2792_v61 }
0x19c0   : > { %v2798_v63 = vadd.f32 %v2797_v62, %v2451_v19 }
0x19c2   : > { %2799 = vadd.xlane.f32.xlu0 %v2798_v63 }
0x1a4b   : > { %v2800_v2 = vpop.xlane.xlu0 %2799 }
0x1a4c   : > { %v2801_v3 = vmul.f32 0.0078125, %v2800_v2 }
0x1a4e   : > { %v2802_v4 = vsub.f32 %v2798_v63, %v2801_v3 }
0x1a50   : > { %v2803_v1 = vmul.f32 %v2802_v4, %v2802_v4 }
0x1a52   : > { %2804 = vadd.xlane.f32.xlu1 %v2803_v1 }
0x1adb   : > { %v2805_v5 = vpop.xlane.xlu1 %2804 }
0x1adc   : > { %v2806_v6 = vmul.f32 0.0078125, %v2805_v5 }
0x1ade   : > { %v2807_v41 = vadd.f32 1e-05, %v2806_v6 }
0x1ae0   : > { %3683 = vrsqrt.f32 %v2807_v41 }
0x1aed   : > { %v3684_v56 = vpop.eup %3683 }
0x1aee   : > { %v2809_v7 = vmul.f32 %v3684_v56, %v2802_v4 }
0x1af0   : > { %v2814_v11 = vmul.f32 %v2813_v42, %v2809_v7 }
0x1af2   : > { %v2819_v12 = vadd.f32 %v2818_v10, %v2814_v11 }
0x1af4   : > { %2820 = vst [vmem:[%s313_s29] sm:$0xff] %v2819_v12 }
0x1af5   : > { %3776 = shalt.err (!%p3773_p11)
}
0x1af6   : > { %s3777_s23 = scalar_lea.hbm %s2833_s17, 128  ;;  %s3781_s13 = scalar_lea.hbm %s4414_s7, 256 }
0x1af7   : > { %p3778_p0 = scmp.ne.s32.totalorder %s2833_s17, %s3777_s23  ;;  %p3782_p3 = scmp.lt.s32.totalorder %s2833_s17, %s4414_s7 }
0x1af8   : > { %p3783_p2 = scmp.lt.s32.totalorder %s3781_s13, %s3777_s23 }
0x1af9   : > { %p3779_p1 = pnand %p3778_p0, %p3928_p5 }
0x1afa   : > { %p3784_p10 = por %p3783_p2, %p3782_p3 }
0x1afb   : > { %p3780_p13 = pneg %p3779_p1 }
0x1afd   : > { %p3785_p12 = pnand %p3784_p10, %p3780_p13 }
0x1aff   : > { %3788 = shalt.err (!%p3785_p12)
}
0x1b00   : > { %3406 = dma.vmem_to_hbm [thread:$0]  (%p3928_p5), %s2836_s8, 128, %s2833_s17, %s2822_s15  }
0x1b01 PF: > { %p3428_p4 = scmp.ge.s32.totalorder %s3831_s27, 2  ;;  %s2847_s9 = sand.u32 1, %s3819_s24  }
0x1b02   : > { %p4424_p7 = scmp.ne.s32.totalorder %s4417_s12, 0  ;;  %s2848_s14 = scalar_lea.sflag [#allocation4], %s2847_s9 }
0x1b04   : > { %p3419_p6 = pnand %p3428_p4, %p4424_p7 }
0x1b06   : > { %p3420_p9 = pneg %p3419_p6 }
0x1b08   : > { %3814 = dma.done.wait (%p3420_p9), %s2848_s14, 128  }
0x1b09   : > { %3816 = vsyncadd (%p3420_p9), %s2848_s14, 4294967168  ;;  %p19_p8 = scmp.ge.s32.totalorder %s3915_s30, 4   ;;  %s4425_s24 = smov %s3823_s25 }
0x1b0a   : > { %s4426_s25 = smov %s3827_s26  ;;  %s4427_s26 = smov %s3926_s10 }
0x1b0b   : > { %s4428_s27 = smov %s3915_s30  ;;  %21 = sbr.rel (!%p19_p8) target bundleno = 5 (0x5), region = 102 }
0x1b10   :  { %2853 = vsyncpa [#allocation3], 1 }
0x1b11   :  { %2855 = vsyncpa [#allocation3 + $0x1], 1 }
0x1b12   :  { %2856 = vsyncpa [#allocation6], 1 }
0x1b13   :  { %2857 = vsyncpa [#allocation4], 1 }
0x1b14   :  { %2859 = vsyncpa [#allocation4 + $0x1], 1 }

</bundles_post_ra>
